<compile_context>
chip_gen: v6e
topology: v6e:2x2x1
jax: 0.10.0
libtpu: 0.0.40
codegen_flags: <defaults>
</compile_context>

<pallas_src>
import functools
import math

import jax
import jax.numpy as jnp
from jax.experimental import pallas as pl
from jax.experimental.pallas import tpu as pltpu


def _round_up(x, m):
    return ((x + m - 1) // m) * m


# ----------------------------------------------------------------------------
# Kernel 1: in-VMEM 5x5 conv (taps via lane rolls) + bias + ReLU +
#           key-padding masked_fill + 1x1 proj + per-block masked-BN stats.
# ----------------------------------------------------------------------------
def _conv_proj_stats_kernel(x_ref, keep_ref, tapmask_ref, w5_ref, b5_ref,
                            w1_ref, cov_ref, stats_ref, *, shifts):
    # x_ref:       [1, Cin, TM]   bf16, lanes = flattened (t, y, x) positions
    # keep_ref:    [1, 1, TM]     f32, 1 = valid (not key-padded, not pad lane)
    # tapmask_ref: [25, TM]       f32, conv-boundary validity per tap
    # w5_ref:      [25, DC, Cin]  f32 conv weight, tap-major
    # b5_ref:      [DC, 1]        f32 conv bias
    # w1_ref:      [NH, DC]       f32 1x1 projection (no bias)
    # cov_ref:     [1, NH, TM]    f32 projected coverage (lane dense)
    # stats_ref:   [1, 1, NH, 3]  f32 per-block (sum, sumsq, count)
    x = x_ref[0].astype(jnp.float32)                       # (Cin, TM)
    keep = keep_ref[0]                                     # (1, TM)
    dc = w5_ref.shape[1]
    nh = stats_ref.shape[2]
    tm = x.shape[1]

    acc = jnp.zeros((dc, tm), jnp.float32)
    for idx, sh in enumerate(shifts):                      # 25 taps, unrolled
        # tap[p] = x[(p + off) % TM]; wrap-around only hits masked taps.
        tap = x if sh == 0 else pltpu.roll(x, sh, 1)
        contrib = jnp.dot(w5_ref[idx], tap,
                          preferred_element_type=jnp.float32)        # (DC, TM)
        acc = acc + contrib * tapmask_ref[idx:idx + 1, :]
    conv = jnp.maximum(acc + b5_ref[...], 0.0)             # bias + ReLU
    conv = conv * keep                                     # masked_fill (pre-proj)
    cov = jnp.dot(w1_ref[...], conv,
                  preferred_element_type=jnp.float32)      # (NH, TM)
    cov_ref[0] = cov

    # masked / padded lanes are exactly 0 in cov (proj has no bias), so plain
    # lane reductions give this block's masked-BatchNorm statistics.
    stats_ref[0, 0, :, 0:1] = jnp.sum(cov, axis=1, keepdims=True)
    stats_ref[0, 0, :, 1:2] = jnp.sum(cov * cov, axis=1, keepdims=True)
    stats_ref[0, 0, :, 2:3] = jnp.broadcast_to(
        jnp.sum(keep, axis=1, keepdims=True), (nh, 1))


def _fused_conv_proj_stats(x, keep, tapmask, w5m, b5c, w1m, shifts, nhead, tm):
    B, cin, Mp = x.shape
    dc = w5m.shape[1]
    nblk = Mp // tm
    kernel = functools.partial(_conv_proj_stats_kernel, shifts=tuple(shifts))
    return pl.pallas_call(
        kernel,
        out_shape=(
            jax.ShapeDtypeStruct((B, nhead, Mp), jnp.float32),
            jax.ShapeDtypeStruct((B, nblk, nhead, 3), jnp.float32),
        ),
        grid_spec=pltpu.PrefetchScalarGridSpec(
            num_scalar_prefetch=0,
            grid=(B, nblk),
            in_specs=[
                pl.BlockSpec((1, cin, tm), lambda bi, j: (bi, 0, j)),
                pl.BlockSpec((1, 1, tm), lambda bi, j: (bi, 0, j)),
                pl.BlockSpec((25, tm), lambda bi, j: (0, 0)),
                pl.BlockSpec((25, dc, cin), lambda bi, j: (0, 0, 0)),
                pl.BlockSpec((dc, 1), lambda bi, j: (0, 0)),
                pl.BlockSpec((nhead, dc), lambda bi, j: (0, 0)),
            ],
            out_specs=(
                pl.BlockSpec((1, nhead, tm), lambda bi, j: (bi, 0, j)),
                pl.BlockSpec((1, 1, nhead, 3), lambda bi, j: (bi, j, 0, 0)),
            ),
        ),
        compiler_params=pltpu.CompilerParams(
            dimension_semantics=("parallel", "parallel")),
    )(x, keep, tapmask, w5m, b5c, w1m)


# ----------------------------------------------------------------------------
# Kernel 2: masked BatchNorm apply, tiled over (batch, position blocks).
# ----------------------------------------------------------------------------
def _bn_apply_kernel(cov_ref, keep_ref, scale_ref, shift_ref, out_ref):
    # masked positions keep their pre-BN value (exactly 0), matching
    # MaskBatchNorm2d's masked scatter semantics.
    out_ref[0] = keep_ref[0] * (cov_ref[0] * scale_ref[...] + shift_ref[...])


def _bn_apply(cov, keep, scale, shift, t_hw, tm):
    B, NH, Mp = cov.shape
    nblk = Mp // tm
    return pl.pallas_call(
        _bn_apply_kernel,
        out_shape=jax.ShapeDtypeStruct((B, NH, t_hw), jnp.float32),
        grid_spec=pltpu.PrefetchScalarGridSpec(
            num_scalar_prefetch=0,
            grid=(B, nblk),
            in_specs=[
                pl.BlockSpec((1, NH, tm), lambda bi, j: (bi, 0, j)),
                pl.BlockSpec((1, 1, tm), lambda bi, j: (bi, 0, j)),
                pl.BlockSpec((NH, 1), lambda bi, j: (0, 0)),
                pl.BlockSpec((NH, 1), lambda bi, j: (0, 0)),
            ],
            # ragged t_hw tail handled as one Pallas-clipped partial block
            out_specs=pl.BlockSpec((1, NH, tm), lambda bi, j: (bi, 0, j)),
        ),
        compiler_params=pltpu.CompilerParams(
            dimension_semantics=("parallel", "parallel")),
    )(cov, keep, scale, shift)


# ----------------------------------------------------------------------------
# Full forward (wrapper = prep glue; hot path lives in the kernels above)
# ----------------------------------------------------------------------------
def attention_refinement_forward(prev_attn, key_padding_mask, h, curr_attn,
                                 tgt_vocab, params, nhead,
                                 cross_coverage=True, self_coverage=True,
                                 tm=2048):
    assert cross_coverage or self_coverage
    bn_, t, l = curr_attn.shape
    b = bn_ // nhead
    w = l // h
    hw = h * w
    assert hw == l

    prev = prev_attn.reshape(b, nhead, t, l)
    curr = curr_attn.reshape(b, nhead, t, l)
    attn_list = []
    if cross_coverage:
        attn_list.append(prev)
    if self_coverage:
        attn_list.append(curr)
    attns = jnp.concatenate(attn_list, axis=1)              # [b, Cin, t, l]
    cin = attns.shape[1]

    # zero attention rows of special tokens {7, 34, 35}
    mask_vocab = jnp.logical_not(
        (tgt_vocab == 7) | (tgt_vocab == 34) | (tgt_vocab == 35))
    attns = attns * mask_vocab[:, None, :, None].astype(attns.dtype)

    # exclusive cumulative coverage over decode steps t
    # TODO(synk): cumsum over t kept in plain JAX (prep glue, not the hot path).
    attns = jnp.cumsum(attns, axis=2) - attns

    # ---- flattened (t, y, x) lane layout; NO im2col materialized in HBM ----
    t_hw = t * hw
    tm_unit = (hw * 128) // math.gcd(hw, 128)                # lcm(hw, 128)
    tm_eff = max(tm_unit, (tm // tm_unit) * tm_unit)         # multiple of unit
    tm_eff = min(tm_eff, _round_up(t_hw, tm_unit))           # don't over-pad
    m_pad = _round_up(t_hw, tm_eff)

    x = attns.reshape(b, cin, t_hw)
    x = jnp.pad(x, ((0, 0), (0, 0), (0, m_pad - t_hw)))
    x = x.astype(jnp.bfloat16)        # halve HBM bytes of the dominant input

    # keep = 1.0 at valid (not key-padded) positions, 0.0 elsewhere (incl pad)
    keep = (~key_padding_mask).astype(jnp.float32)                    # [b, l]
    keep = jnp.broadcast_to(keep[:, None, :], (b, t, l)).reshape(b, 1, t_hw)
    keep = jnp.pad(keep, ((0, 0), (0, 0), (0, m_pad - t_hw)))

    # per-tap boundary masks + lane-roll amounts; identical for every block
    # because tm_eff is a multiple of h*w (block starts fall on t boundaries).
    pos = jnp.arange(tm_eff)
    yy = (pos // w) % h
    xx = pos % w
    rows, shifts = [], []
    for ky in range(5):
        for kx in range(5):
            dy, dx = ky - 2, kx - 2
            off = dy * w + dx                    # tap[p] = x[p + off]
            shifts.append((-off) % tm_eff)       # np.roll-style shift amount
            rows.append((yy + dy >= 0) & (yy + dy < h)
                        & (xx + dx >= 0) & (xx + dx < w))
    tapmask = jnp.stack(rows).astype(jnp.float32)                    # [25, TM]

    # weights in tap-major matmul layout (K ordered (ky, kx) to match taps)
    dc = params["w5"].shape[0]
    w5m = jnp.transpose(params["w5"], (2, 3, 0, 1)).reshape(25, dc, cin)
    w5m = w5m.astype(jnp.float32)
    b5c = params["b5"].reshape(dc, 1).astype(jnp.float32)
    w1m = params["w1"].reshape(nhead, dc).astype(jnp.float32)

    cov, stats = _fused_conv_proj_stats(x, keep, tapmask, w5m, b5c, w1m,
                                        shifts, nhead, tm_eff)

    # MaskBatchNorm2d: train-mode batch statistics over un-masked positions.
    # TODO(synk): running-mean/var buffer updates are stateful and not modeled.
    cnt = jnp.maximum(jnp.sum(stats[:, :, 0, 2]), 1.0)
    mean = jnp.sum(stats[..., 0], axis=(0, 1)) / cnt                  # (NH,)
    var = jnp.maximum(jnp.sum(stats[..., 1], axis=(0, 1)) / cnt - mean * mean,
                      0.0)
    eps = 1e-5
    scale = params["gamma"] * jax.lax.rsqrt(var + eps)
    shift = params["beta"] - mean * scale

    out = _bn_apply(cov, keep,
                    scale.reshape(nhead, 1).astype(jnp.float32),
                    shift.reshape(nhead, 1).astype(jnp.float32),
                    t_hw, tm_eff)
    # (b, nhead, t*hw) is row-major identical to ((b*nhead), t, (h*w)):
    return out.reshape(b * nhead, t, hw)


if __name__ == "__main__":
    nhead, dc = 4, 8
    b, t, h, w = 2, 6, 4, 8
    l = h * w
    in_chs = 2 * nhead          # cross_coverage and self_coverage

    key = jax.random.PRNGKey(0)
    k = jax.random.split(key, 6)

    prev_attn = jax.nn.softmax(
        jax.random.normal(k[0], (b * nhead, t, l), jnp.float32), axis=-1)
    curr_attn = jax.nn.softmax(
        jax.random.normal(k[1], (b * nhead, t, l), jnp.float32), axis=-1)
    lens = jnp.array([l, l - 6])
    key_padding_mask = jnp.arange(l)[None, :] >= lens[:, None]   # [b, l] bool
    tgt_vocab = jax.random.randint(k[2], (b, t), 0, 40)          # [b, t] int

    # deterministic synthetic parameters (torch-native layouts)
    params = {
        "w5": jax.random.normal(k[3], (dc, in_chs, 5, 5), jnp.float32) * 0.5,
        "b5": jax.random.normal(k[4], (dc,), jnp.float32) * 0.5,
        "w1": jax.random.normal(k[5], (nhead, dc), jnp.float32) * 0.5,
        "gamma": jnp.ones((nhead,), jnp.float32),   # BatchNorm1d default init
        "beta": jnp.zeros((nhead,), jnp.float32),
    }

    out = attention_refinement_forward(prev_attn, key_padding_mask, h,
                                       curr_attn, tgt_vocab, params, nhead,
                                       cross_coverage=True, self_coverage=True)
    out = jax.block_until_ready(out)
    assert out.shape == (b * nhead, t, l), out.shape
    assert bool(jnp.all(jnp.isfinite(out)))

    # sanity: key-padded positions stay exactly 0; unmasked positions are
    # batch-normalized (per-head mean ~ 0, var ~ 1 since gamma=1, beta=0).
    outv = out.reshape(b, nhead, t, l)
    keepv = (~key_padding_mask)[:, None, None, :]
    assert bool(jnp.all(jnp.where(keepv, 0.0, outv) == 0.0))
    kf = jnp.broadcast_to(keepv, outv.shape).astype(jnp.float32)
    n_valid = jnp.sum(kf[:, 0])
    mean_h = jnp.sum(outv * kf, axis=(0, 2, 3)) / n_valid
    var_h = jnp.sum(outv * outv * kf, axis=(0, 2, 3)) / n_valid - mean_h ** 2
    assert float(jnp.max(jnp.abs(mean_h))) < 5e-2
    assert float(jnp.max(jnp.abs(var_h - 1.0))) < 0.25

    print("KERNEL_OK")
</pallas_src>

<mosaic_0001>
module attributes {stable_mosaic.version = 11 : i64} {
  func.func @_conv_proj_stats_kernel(%arg0: i32, %arg1: i32, %arg2: memref<1x8x256xbf16, #tpu.memory_space<vmem>>, %arg3: memref<1x1x256xf32, #tpu.memory_space<vmem>>, %arg4: memref<25x256xf32, #tpu.memory_space<vmem>>, %arg5: memref<25x8x8xf32, #tpu.memory_space<vmem>>, %arg6: memref<8x1xf32, #tpu.memory_space<vmem>>, %arg7: memref<4x8xf32, #tpu.memory_space<vmem>>, %arg8: memref<1x4x256xf32, #tpu.memory_space<vmem>>, %arg9: memref<1x1x4x3xf32, #tpu.memory_space<vmem>>) attributes {dimension_semantics = [#tpu.dimension_semantics<parallel>, #tpu.dimension_semantics<parallel>], iteration_bounds = array<i64: 2, 1>, scalar_prefetch = 0 : i64, scratch_operands = 0 : i64, tpu.core_type = #tpu.core_type<tc>, window_params = [{transform_indices = @transform_0, window_bounds = array<i64: 1, 8, 256>}, {transform_indices = @transform_1, window_bounds = array<i64: 1, 1, 256>}, {pipeline_mode = #tpu.pipeline_mode<synchronous>, transform_indices = @transform_2, window_bounds = array<i64: 25, 256>}, {pipeline_mode = #tpu.pipeline_mode<synchronous>, transform_indices = @transform_3, window_bounds = array<i64: 25, 8, 8>}, {pipeline_mode = #tpu.pipeline_mode<synchronous>, transform_indices = @transform_4, window_bounds = array<i64: 8, 1>}, {pipeline_mode = #tpu.pipeline_mode<synchronous>, transform_indices = @transform_5, window_bounds = array<i64: 4, 8>}, {transform_indices = @transform_6, window_bounds = array<i64: 1, 4, 256>}, {transform_indices = @transform_7, window_bounds = array<i64: 1, 1, 4, 3>}]} {
    %c0 = arith.constant 0 : index
    %c0_0 = arith.constant 0 : index
    %c0_1 = arith.constant 0 : index
    %0 = vector.load %arg2[%c0, %c0_0, %c0_1] : memref<1x8x256xbf16, #tpu.memory_space<vmem>>, vector<1x8x256xbf16>
    %1 = vector.shape_cast %0 : vector<1x8x256xbf16> to vector<8x256xbf16>
    %2 = arith.extf %1 : vector<8x256xbf16> to vector<8x256xf32>
    %c0_2 = arith.constant 0 : index
    %c0_3 = arith.constant 0 : index
    %c0_4 = arith.constant 0 : index
    %3 = vector.load %arg3[%c0_2, %c0_3, %c0_4] : memref<1x1x256xf32, #tpu.memory_space<vmem>>, vector<1x1x256xf32>
    %4 = vector.shape_cast %3 : vector<1x1x256xf32> to vector<1x256xf32>
    %cst = arith.constant 0.000000e+00 : f32
    %5 = vector.broadcast %cst : f32 to vector<8x256xf32>
    %c18_i32 = arith.constant 18 : i32
    %6 = tpu.dynamic_rotate %2 by %c18_i32 dim 1 : vector<8x256xf32>, i32 -> vector<8x256xf32>
    %c0_5 = arith.constant 0 : index
    %c0_6 = arith.constant 0 : index
    %c0_7 = arith.constant 0 : index
    %7 = vector.load %arg5[%c0_5, %c0_6, %c0_7] : memref<25x8x8xf32, #tpu.memory_space<vmem>>, vector<1x8x8xf32>
    %8 = vector.shape_cast %7 : vector<1x8x8xf32> to vector<8x8xf32>
    %cst_8 = arith.constant dense<0.000000e+00> : vector<8x256xf32>
    %9 = tpu.matmul %8, %6, %cst_8 {dimension_numbers = #tpu.dot_dimension_numbers<[1], [0], [0], [1], [0, 0, 1, 1], [], []>} : vector<8x8xf32>, vector<8x256xf32>, vector<8x256xf32> -> vector<8x256xf32>
    %c0_9 = arith.constant 0 : index
    %c0_10 = arith.constant 0 : index
    %10 = vector.load %arg4[%c0_9, %c0_10] : memref<25x256xf32, #tpu.memory_space<vmem>>, vector<1x256xf32>
    %11 = vector.broadcast %10 : vector<1x256xf32> to vector<8x256xf32>
    %12 = arith.mulf %9, %11 : vector<8x256xf32>
    %13 = arith.addf %5, %12 : vector<8x256xf32>
    %c17_i32 = arith.constant 17 : i32
    %14 = tpu.dynamic_rotate %2 by %c17_i32 dim 1 : vector<8x256xf32>, i32 -> vector<8x256xf32>
    %c1 = arith.constant 1 : index
    %c0_11 = arith.constant 0 : index
    %c0_12 = arith.constant 0 : index
    %15 = vector.load %arg5[%c1, %c0_11, %c0_12] : memref<25x8x8xf32, #tpu.memory_space<vmem>>, vector<1x8x8xf32>
    %16 = vector.shape_cast %15 : vector<1x8x8xf32> to vector<8x8xf32>
    %cst_13 = arith.constant dense<0.000000e+00> : vector<8x256xf32>
    %17 = tpu.matmul %16, %14, %cst_13 {dimension_numbers = #tpu.dot_dimension_numbers<[1], [0], [0], [1], [0, 0, 1, 1], [], []>} : vector<8x8xf32>, vector<8x256xf32>, vector<8x256xf32> -> vector<8x256xf32>
    %c1_14 = arith.constant 1 : index
    %c0_15 = arith.constant 0 : index
    %18 = vector.load %arg4[%c1_14, %c0_15] : memref<25x256xf32, #tpu.memory_space<vmem>>, vector<1x256xf32>
    %19 = vector.broadcast %18 : vector<1x256xf32> to vector<8x256xf32>
    %20 = arith.mulf %17, %19 : vector<8x256xf32>
    %21 = arith.addf %13, %20 : vector<8x256xf32>
    %c16_i32 = arith.constant 16 : i32
    %22 = tpu.dynamic_rotate %2 by %c16_i32 dim 1 : vector<8x256xf32>, i32 -> vector<8x256xf32>
    %c2 = arith.constant 2 : index
    %c0_16 = arith.constant 0 : index
    %c0_17 = arith.constant 0 : index
    %23 = vector.load %arg5[%c2, %c0_16, %c0_17] : memref<25x8x8xf32, #tpu.memory_space<vmem>>, vector<1x8x8xf32>
    %24 = vector.shape_cast %23 : vector<1x8x8xf32> to vector<8x8xf32>
    %cst_18 = arith.constant dense<0.000000e+00> : vector<8x256xf32>
    %25 = tpu.matmul %24, %22, %cst_18 {dimension_numbers = #tpu.dot_dimension_numbers<[1], [0], [0], [1], [0, 0, 1, 1], [], []>} : vector<8x8xf32>, vector<8x256xf32>, vector<8x256xf32> -> vector<8x256xf32>
    %c2_19 = arith.constant 2 : index
    %c0_20 = arith.constant 0 : index
    %26 = vector.load %arg4[%c2_19, %c0_20] : memref<25x256xf32, #tpu.memory_space<vmem>>, vector<1x256xf32>
    %27 = vector.broadcast %26 : vector<1x256xf32> to vector<8x256xf32>
    %28 = arith.mulf %25, %27 : vector<8x256xf32>
    %29 = arith.addf %21, %28 : vector<8x256xf32>
    %c15_i32 = arith.constant 15 : i32
    %30 = tpu.dynamic_rotate %2 by %c15_i32 dim 1 : vector<8x256xf32>, i32 -> vector<8x256xf32>
    %c3 = arith.constant 3 : index
    %c0_21 = arith.constant 0 : index
    %c0_22 = arith.constant 0 : index
    %31 = vector.load %arg5[%c3, %c0_21, %c0_22] : memref<25x8x8xf32, #tpu.memory_space<vmem>>, vector<1x8x8xf32>
    %32 = vector.shape_cast %31 : vector<1x8x8xf32> to vector<8x8xf32>
    %cst_23 = arith.constant dense<0.000000e+00> : vector<8x256xf32>
    %33 = tpu.matmul %32, %30, %cst_23 {dimension_numbers = #tpu.dot_dimension_numbers<[1], [0], [0], [1], [0, 0, 1, 1], [], []>} : vector<8x8xf32>, vector<8x256xf32>, vector<8x256xf32> -> vector<8x256xf32>
    %c3_24 = arith.constant 3 : index
    %c0_25 = arith.constant 0 : index
    %34 = vector.load %arg4[%c3_24, %c0_25] : memref<25x256xf32, #tpu.memory_space<vmem>>, vector<1x256xf32>
    %35 = vector.broadcast %34 : vector<1x256xf32> to vector<8x256xf32>
    %36 = arith.mulf %33, %35 : vector<8x256xf32>
    %37 = arith.addf %29, %36 : vector<8x256xf32>
    %c14_i32 = arith.constant 14 : i32
    %38 = tpu.dynamic_rotate %2 by %c14_i32 dim 1 : vector<8x256xf32>, i32 -> vector<8x256xf32>
    %c4 = arith.constant 4 : index
    %c0_26 = arith.constant 0 : index
    %c0_27 = arith.constant 0 : index
    %39 = vector.load %arg5[%c4, %c0_26, %c0_27] : memref<25x8x8xf32, #tpu.memory_space<vmem>>, vector<1x8x8xf32>
    %40 = vector.shape_cast %39 : vector<1x8x8xf32> to vector<8x8xf32>
    %cst_28 = arith.constant dense<0.000000e+00> : vector<8x256xf32>
    %41 = tpu.matmul %40, %38, %cst_28 {dimension_numbers = #tpu.dot_dimension_numbers<[1], [0], [0], [1], [0, 0, 1, 1], [], []>} : vector<8x8xf32>, vector<8x256xf32>, vector<8x256xf32> -> vector<8x256xf32>
    %c4_29 = arith.constant 4 : index
    %c0_30 = arith.constant 0 : index
    %42 = vector.load %arg4[%c4_29, %c0_30] : memref<25x256xf32, #tpu.memory_space<vmem>>, vector<1x256xf32>
    %43 = vector.broadcast %42 : vector<1x256xf32> to vector<8x256xf32>
    %44 = arith.mulf %41, %43 : vector<8x256xf32>
    %45 = arith.addf %37, %44 : vector<8x256xf32>
    %c10_i32 = arith.constant 10 : i32
    %46 = tpu.dynamic_rotate %2 by %c10_i32 dim 1 : vector<8x256xf32>, i32 -> vector<8x256xf32>
    %c5 = arith.constant 5 : index
    %c0_31 = arith.constant 0 : index
    %c0_32 = arith.constant 0 : index
    %47 = vector.load %arg5[%c5, %c0_31, %c0_32] : memref<25x8x8xf32, #tpu.memory_space<vmem>>, vector<1x8x8xf32>
    %48 = vector.shape_cast %47 : vector<1x8x8xf32> to vector<8x8xf32>
    %cst_33 = arith.constant dense<0.000000e+00> : vector<8x256xf32>
    %49 = tpu.matmul %48, %46, %cst_33 {dimension_numbers = #tpu.dot_dimension_numbers<[1], [0], [0], [1], [0, 0, 1, 1], [], []>} : vector<8x8xf32>, vector<8x256xf32>, vector<8x256xf32> -> vector<8x256xf32>
    %c5_34 = arith.constant 5 : index
    %c0_35 = arith.constant 0 : index
    %50 = vector.load %arg4[%c5_34, %c0_35] : memref<25x256xf32, #tpu.memory_space<vmem>>, vector<1x256xf32>
    %51 = vector.broadcast %50 : vector<1x256xf32> to vector<8x256xf32>
    %52 = arith.mulf %49, %51 : vector<8x256xf32>
    %53 = arith.addf %45, %52 : vector<8x256xf32>
    %c9_i32 = arith.constant 9 : i32
    %54 = tpu.dynamic_rotate %2 by %c9_i32 dim 1 : vector<8x256xf32>, i32 -> vector<8x256xf32>
    %c6 = arith.constant 6 : index
    %c0_36 = arith.constant 0 : index
    %c0_37 = arith.constant 0 : index
    %55 = vector.load %arg5[%c6, %c0_36, %c0_37] : memref<25x8x8xf32, #tpu.memory_space<vmem>>, vector<1x8x8xf32>
    %56 = vector.shape_cast %55 : vector<1x8x8xf32> to vector<8x8xf32>
    %cst_38 = arith.constant dense<0.000000e+00> : vector<8x256xf32>
    %57 = tpu.matmul %56, %54, %cst_38 {dimension_numbers = #tpu.dot_dimension_numbers<[1], [0], [0], [1], [0, 0, 1, 1], [], []>} : vector<8x8xf32>, vector<8x256xf32>, vector<8x256xf32> -> vector<8x256xf32>
    %c6_39 = arith.constant 6 : index
    %c0_40 = arith.constant 0 : index
    %58 = vector.load %arg4[%c6_39, %c0_40] : memref<25x256xf32, #tpu.memory_space<vmem>>, vector<1x256xf32>
    %59 = vector.broadcast %58 : vector<1x256xf32> to vector<8x256xf32>
    %60 = arith.mulf %57, %59 : vector<8x256xf32>
    %61 = arith.addf %53, %60 : vector<8x256xf32>
    %c8_i32 = arith.constant 8 : i32
    %62 = tpu.dynamic_rotate %2 by %c8_i32 dim 1 : vector<8x256xf32>, i32 -> vector<8x256xf32>
    %c7 = arith.constant 7 : index
    %c0_41 = arith.constant 0 : index
    %c0_42 = arith.constant 0 : index
    %63 = vector.load %arg5[%c7, %c0_41, %c0_42] : memref<25x8x8xf32, #tpu.memory_space<vmem>>, vector<1x8x8xf32>
    %64 = vector.shape_cast %63 : vector<1x8x8xf32> to vector<8x8xf32>
    %cst_43 = arith.constant dense<0.000000e+00> : vector<8x256xf32>
    %65 = tpu.matmul %64, %62, %cst_43 {dimension_numbers = #tpu.dot_dimension_numbers<[1], [0], [0], [1], [0, 0, 1, 1], [], []>} : vector<8x8xf32>, vector<8x256xf32>, vector<8x256xf32> -> vector<8x256xf32>
    %c7_44 = arith.constant 7 : index
    %c0_45 = arith.constant 0 : index
    %66 = vector.load %arg4[%c7_44, %c0_45] : memref<25x256xf32, #tpu.memory_space<vmem>>, vector<1x256xf32>
    %67 = vector.broadcast %66 : vector<1x256xf32> to vector<8x256xf32>
    %68 = arith.mulf %65, %67 : vector<8x256xf32>
    %69 = arith.addf %61, %68 : vector<8x256xf32>
    %c7_i32 = arith.constant 7 : i32
    %70 = tpu.dynamic_rotate %2 by %c7_i32 dim 1 : vector<8x256xf32>, i32 -> vector<8x256xf32>
    %c8 = arith.constant 8 : index
    %c0_46 = arith.constant 0 : index
    %c0_47 = arith.constant 0 : index
    %71 = vector.load %arg5[%c8, %c0_46, %c0_47] : memref<25x8x8xf32, #tpu.memory_space<vmem>>, vector<1x8x8xf32>
    %72 = vector.shape_cast %71 : vector<1x8x8xf32> to vector<8x8xf32>
    %cst_48 = arith.constant dense<0.000000e+00> : vector<8x256xf32>
    %73 = tpu.matmul %72, %70, %cst_48 {dimension_numbers = #tpu.dot_dimension_numbers<[1], [0], [0], [1], [0, 0, 1, 1], [], []>} : vector<8x8xf32>, vector<8x256xf32>, vector<8x256xf32> -> vector<8x256xf32>
    %c8_49 = arith.constant 8 : index
    %c0_50 = arith.constant 0 : index
    %74 = vector.load %arg4[%c8_49, %c0_50] : memref<25x256xf32, #tpu.memory_space<vmem>>, vector<1x256xf32>
    %75 = vector.broadcast %74 : vector<1x256xf32> to vector<8x256xf32>
    %76 = arith.mulf %73, %75 : vector<8x256xf32>
    %77 = arith.addf %69, %76 : vector<8x256xf32>
    %c6_i32 = arith.constant 6 : i32
    %78 = tpu.dynamic_rotate %2 by %c6_i32 dim 1 : vector<8x256xf32>, i32 -> vector<8x256xf32>
    %c9 = arith.constant 9 : index
    %c0_51 = arith.constant 0 : index
    %c0_52 = arith.constant 0 : index
    %79 = vector.load %arg5[%c9, %c0_51, %c0_52] : memref<25x8x8xf32, #tpu.memory_space<vmem>>, vector<1x8x8xf32>
    %80 = vector.shape_cast %79 : vector<1x8x8xf32> to vector<8x8xf32>
    %cst_53 = arith.constant dense<0.000000e+00> : vector<8x256xf32>
    %81 = tpu.matmul %80, %78, %cst_53 {dimension_numbers = #tpu.dot_dimension_numbers<[1], [0], [0], [1], [0, 0, 1, 1], [], []>} : vector<8x8xf32>, vector<8x256xf32>, vector<8x256xf32> -> vector<8x256xf32>
    %c9_54 = arith.constant 9 : index
    %c0_55 = arith.constant 0 : index
    %82 = vector.load %arg4[%c9_54, %c0_55] : memref<25x256xf32, #tpu.memory_space<vmem>>, vector<1x256xf32>
    %83 = vector.broadcast %82 : vector<1x256xf32> to vector<8x256xf32>
    %84 = arith.mulf %81, %83 : vector<8x256xf32>
    %85 = arith.addf %77, %84 : vector<8x256xf32>
    %c2_i32 = arith.constant 2 : i32
    %86 = tpu.dynamic_rotate %2 by %c2_i32 dim 1 : vector<8x256xf32>, i32 -> vector<8x256xf32>
    %c10 = arith.constant 10 : index
    %c0_56 = arith.constant 0 : index
    %c0_57 = arith.constant 0 : index
    %87 = vector.load %arg5[%c10, %c0_56, %c0_57] : memref<25x8x8xf32, #tpu.memory_space<vmem>>, vector<1x8x8xf32>
    %88 = vector.shape_cast %87 : vector<1x8x8xf32> to vector<8x8xf32>
    %cst_58 = arith.constant dense<0.000000e+00> : vector<8x256xf32>
    %89 = tpu.matmul %88, %86, %cst_58 {dimension_numbers = #tpu.dot_dimension_numbers<[1], [0], [0], [1], [0, 0, 1, 1], [], []>} : vector<8x8xf32>, vector<8x256xf32>, vector<8x256xf32> -> vector<8x256xf32>
    %c10_59 = arith.constant 10 : index
    %c0_60 = arith.constant 0 : index
    %90 = vector.load %arg4[%c10_59, %c0_60] : memref<25x256xf32, #tpu.memory_space<vmem>>, vector<1x256xf32>
    %91 = vector.broadcast %90 : vector<1x256xf32> to vector<8x256xf32>
    %92 = arith.mulf %89, %91 : vector<8x256xf32>
    %93 = arith.addf %85, %92 : vector<8x256xf32>
    %c1_i32 = arith.constant 1 : i32
    %94 = tpu.dynamic_rotate %2 by %c1_i32 dim 1 : vector<8x256xf32>, i32 -> vector<8x256xf32>
    %c11 = arith.constant 11 : index
    %c0_61 = arith.constant 0 : index
    %c0_62 = arith.constant 0 : index
    %95 = vector.load %arg5[%c11, %c0_61, %c0_62] : memref<25x8x8xf32, #tpu.memory_space<vmem>>, vector<1x8x8xf32>
    %96 = vector.shape_cast %95 : vector<1x8x8xf32> to vector<8x8xf32>
    %cst_63 = arith.constant dense<0.000000e+00> : vector<8x256xf32>
    %97 = tpu.matmul %96, %94, %cst_63 {dimension_numbers = #tpu.dot_dimension_numbers<[1], [0], [0], [1], [0, 0, 1, 1], [], []>} : vector<8x8xf32>, vector<8x256xf32>, vector<8x256xf32> -> vector<8x256xf32>
    %c11_64 = arith.constant 11 : index
    %c0_65 = arith.constant 0 : index
    %98 = vector.load %arg4[%c11_64, %c0_65] : memref<25x256xf32, #tpu.memory_space<vmem>>, vector<1x256xf32>
    %99 = vector.broadcast %98 : vector<1x256xf32> to vector<8x256xf32>
    %100 = arith.mulf %97, %99 : vector<8x256xf32>
    %101 = arith.addf %93, %100 : vector<8x256xf32>
    %c12 = arith.constant 12 : index
    %c0_66 = arith.constant 0 : index
    %c0_67 = arith.constant 0 : index
    %102 = vector.load %arg5[%c12, %c0_66, %c0_67] : memref<25x8x8xf32, #tpu.memory_space<vmem>>, vector<1x8x8xf32>
    %103 = vector.shape_cast %102 : vector<1x8x8xf32> to vector<8x8xf32>
    %cst_68 = arith.constant dense<0.000000e+00> : vector<8x256xf32>
    %104 = tpu.matmul %103, %2, %cst_68 {dimension_numbers = #tpu.dot_dimension_numbers<[1], [0], [0], [1], [0, 0, 1, 1], [], []>} : vector<8x8xf32>, vector<8x256xf32>, vector<8x256xf32> -> vector<8x256xf32>
    %c12_69 = arith.constant 12 : index
    %c0_70 = arith.constant 0 : index
    %105 = vector.load %arg4[%c12_69, %c0_70] : memref<25x256xf32, #tpu.memory_space<vmem>>, vector<1x256xf32>
    %106 = vector.broadcast %105 : vector<1x256xf32> to vector<8x256xf32>
    %107 = arith.mulf %104, %106 : vector<8x256xf32>
    %108 = arith.addf %101, %107 : vector<8x256xf32>
    %c255_i32 = arith.constant 255 : i32
    %109 = tpu.dynamic_rotate %2 by %c255_i32 dim 1 : vector<8x256xf32>, i32 -> vector<8x256xf32>
    %c13 = arith.constant 13 : index
    %c0_71 = arith.constant 0 : index
    %c0_72 = arith.constant 0 : index
    %110 = vector.load %arg5[%c13, %c0_71, %c0_72] : memref<25x8x8xf32, #tpu.memory_space<vmem>>, vector<1x8x8xf32>
    %111 = vector.shape_cast %110 : vector<1x8x8xf32> to vector<8x8xf32>
    %cst_73 = arith.constant dense<0.000000e+00> : vector<8x256xf32>
    %112 = tpu.matmul %111, %109, %cst_73 {dimension_numbers = #tpu.dot_dimension_numbers<[1], [0], [0], [1], [0, 0, 1, 1], [], []>} : vector<8x8xf32>, vector<8x256xf32>, vector<8x256xf32> -> vector<8x256xf32>
    %c13_74 = arith.constant 13 : index
    %c0_75 = arith.constant 0 : index
    %113 = vector.load %arg4[%c13_74, %c0_75] : memref<25x256xf32, #tpu.memory_space<vmem>>, vector<1x256xf32>
    %114 = vector.broadcast %113 : vector<1x256xf32> to vector<8x256xf32>
    %115 = arith.mulf %112, %114 : vector<8x256xf32>
    %116 = arith.addf %108, %115 : vector<8x256xf32>
    %c254_i32 = arith.constant 254 : i32
    %117 = tpu.dynamic_rotate %2 by %c254_i32 dim 1 : vector<8x256xf32>, i32 -> vector<8x256xf32>
    %c14 = arith.constant 14 : index
    %c0_76 = arith.constant 0 : index
    %c0_77 = arith.constant 0 : index
    %118 = vector.load %arg5[%c14, %c0_76, %c0_77] : memref<25x8x8xf32, #tpu.memory_space<vmem>>, vector<1x8x8xf32>
    %119 = vector.shape_cast %118 : vector<1x8x8xf32> to vector<8x8xf32>
    %cst_78 = arith.constant dense<0.000000e+00> : vector<8x256xf32>
    %120 = tpu.matmul %119, %117, %cst_78 {dimension_numbers = #tpu.dot_dimension_numbers<[1], [0], [0], [1], [0, 0, 1, 1], [], []>} : vector<8x8xf32>, vector<8x256xf32>, vector<8x256xf32> -> vector<8x256xf32>
    %c14_79 = arith.constant 14 : index
    %c0_80 = arith.constant 0 : index
    %121 = vector.load %arg4[%c14_79, %c0_80] : memref<25x256xf32, #tpu.memory_space<vmem>>, vector<1x256xf32>
    %122 = vector.broadcast %121 : vector<1x256xf32> to vector<8x256xf32>
    %123 = arith.mulf %120, %122 : vector<8x256xf32>
    %124 = arith.addf %116, %123 : vector<8x256xf32>
    %c250_i32 = arith.constant 250 : i32
    %125 = tpu.dynamic_rotate %2 by %c250_i32 dim 1 : vector<8x256xf32>, i32 -> vector<8x256xf32>
    %c15 = arith.constant 15 : index
    %c0_81 = arith.constant 0 : index
    %c0_82 = arith.constant 0 : index
    %126 = vector.load %arg5[%c15, %c0_81, %c0_82] : memref<25x8x8xf32, #tpu.memory_space<vmem>>, vector<1x8x8xf32>
    %127 = vector.shape_cast %126 : vector<1x8x8xf32> to vector<8x8xf32>
    %cst_83 = arith.constant dense<0.000000e+00> : vector<8x256xf32>
    %128 = tpu.matmul %127, %125, %cst_83 {dimension_numbers = #tpu.dot_dimension_numbers<[1], [0], [0], [1], [0, 0, 1, 1], [], []>} : vector<8x8xf32>, vector<8x256xf32>, vector<8x256xf32> -> vector<8x256xf32>
    %c15_84 = arith.constant 15 : index
    %c0_85 = arith.constant 0 : index
    %129 = vector.load %arg4[%c15_84, %c0_85] : memref<25x256xf32, #tpu.memory_space<vmem>>, vector<1x256xf32>
    %130 = vector.broadcast %129 : vector<1x256xf32> to vector<8x256xf32>
    %131 = arith.mulf %128, %130 : vector<8x256xf32>
    %132 = arith.addf %124, %131 : vector<8x256xf32>
    %c249_i32 = arith.constant 249 : i32
    %133 = tpu.dynamic_rotate %2 by %c249_i32 dim 1 : vector<8x256xf32>, i32 -> vector<8x256xf32>
    %c16 = arith.constant 16 : index
    %c0_86 = arith.constant 0 : index
    %c0_87 = arith.constant 0 : index
    %134 = vector.load %arg5[%c16, %c0_86, %c0_87] : memref<25x8x8xf32, #tpu.memory_space<vmem>>, vector<1x8x8xf32>
    %135 = vector.shape_cast %134 : vector<1x8x8xf32> to vector<8x8xf32>
    %cst_88 = arith.constant dense<0.000000e+00> : vector<8x256xf32>
    %136 = tpu.matmul %135, %133, %cst_88 {dimension_numbers = #tpu.dot_dimension_numbers<[1], [0], [0], [1], [0, 0, 1, 1], [], []>} : vector<8x8xf32>, vector<8x256xf32>, vector<8x256xf32> -> vector<8x256xf32>
    %c16_89 = arith.constant 16 : index
    %c0_90 = arith.constant 0 : index
    %137 = vector.load %arg4[%c16_89, %c0_90] : memref<25x256xf32, #tpu.memory_space<vmem>>, vector<1x256xf32>
    %138 = vector.broadcast %137 : vector<1x256xf32> to vector<8x256xf32>
    %139 = arith.mulf %136, %138 : vector<8x256xf32>
    %140 = arith.addf %132, %139 : vector<8x256xf32>
    %c248_i32 = arith.constant 248 : i32
    %141 = tpu.dynamic_rotate %2 by %c248_i32 dim 1 : vector<8x256xf32>, i32 -> vector<8x256xf32>
    %c17 = arith.constant 17 : index
    %c0_91 = arith.constant 0 : index
    %c0_92 = arith.constant 0 : index
    %142 = vector.load %arg5[%c17, %c0_91, %c0_92] : memref<25x8x8xf32, #tpu.memory_space<vmem>>, vector<1x8x8xf32>
    %143 = vector.shape_cast %142 : vector<1x8x8xf32> to vector<8x8xf32>
    %cst_93 = arith.constant dense<0.000000e+00> : vector<8x256xf32>
    %144 = tpu.matmul %143, %141, %cst_93 {dimension_numbers = #tpu.dot_dimension_numbers<[1], [0], [0], [1], [0, 0, 1, 1], [], []>} : vector<8x8xf32>, vector<8x256xf32>, vector<8x256xf32> -> vector<8x256xf32>
    %c17_94 = arith.constant 17 : index
    %c0_95 = arith.constant 0 : index
    %145 = vector.load %arg4[%c17_94, %c0_95] : memref<25x256xf32, #tpu.memory_space<vmem>>, vector<1x256xf32>
    %146 = vector.broadcast %145 : vector<1x256xf32> to vector<8x256xf32>
    %147 = arith.mulf %144, %146 : vector<8x256xf32>
    %148 = arith.addf %140, %147 : vector<8x256xf32>
    %c247_i32 = arith.constant 247 : i32
    %149 = tpu.dynamic_rotate %2 by %c247_i32 dim 1 : vector<8x256xf32>, i32 -> vector<8x256xf32>
    %c18 = arith.constant 18 : index
    %c0_96 = arith.constant 0 : index
    %c0_97 = arith.constant 0 : index
    %150 = vector.load %arg5[%c18, %c0_96, %c0_97] : memref<25x8x8xf32, #tpu.memory_space<vmem>>, vector<1x8x8xf32>
    %151 = vector.shape_cast %150 : vector<1x8x8xf32> to vector<8x8xf32>
    %cst_98 = arith.constant dense<0.000000e+00> : vector<8x256xf32>
    %152 = tpu.matmul %151, %149, %cst_98 {dimension_numbers = #tpu.dot_dimension_numbers<[1], [0], [0], [1], [0, 0, 1, 1], [], []>} : vector<8x8xf32>, vector<8x256xf32>, vector<8x256xf32> -> vector<8x256xf32>
    %c18_99 = arith.constant 18 : index
    %c0_100 = arith.constant 0 : index
    %153 = vector.load %arg4[%c18_99, %c0_100] : memref<25x256xf32, #tpu.memory_space<vmem>>, vector<1x256xf32>
    %154 = vector.broadcast %153 : vector<1x256xf32> to vector<8x256xf32>
    %155 = arith.mulf %152, %154 : vector<8x256xf32>
    %156 = arith.addf %148, %155 : vector<8x256xf32>
    %c246_i32 = arith.constant 246 : i32
    %157 = tpu.dynamic_rotate %2 by %c246_i32 dim 1 : vector<8x256xf32>, i32 -> vector<8x256xf32>
    %c19 = arith.constant 19 : index
    %c0_101 = arith.constant 0 : index
    %c0_102 = arith.constant 0 : index
    %158 = vector.load %arg5[%c19, %c0_101, %c0_102] : memref<25x8x8xf32, #tpu.memory_space<vmem>>, vector<1x8x8xf32>
    %159 = vector.shape_cast %158 : vector<1x8x8xf32> to vector<8x8xf32>
    %cst_103 = arith.constant dense<0.000000e+00> : vector<8x256xf32>
    %160 = tpu.matmul %159, %157, %cst_103 {dimension_numbers = #tpu.dot_dimension_numbers<[1], [0], [0], [1], [0, 0, 1, 1], [], []>} : vector<8x8xf32>, vector<8x256xf32>, vector<8x256xf32> -> vector<8x256xf32>
    %c19_104 = arith.constant 19 : index
    %c0_105 = arith.constant 0 : index
    %161 = vector.load %arg4[%c19_104, %c0_105] : memref<25x256xf32, #tpu.memory_space<vmem>>, vector<1x256xf32>
    %162 = vector.broadcast %161 : vector<1x256xf32> to vector<8x256xf32>
    %163 = arith.mulf %160, %162 : vector<8x256xf32>
    %164 = arith.addf %156, %163 : vector<8x256xf32>
    %c242_i32 = arith.constant 242 : i32
    %165 = tpu.dynamic_rotate %2 by %c242_i32 dim 1 : vector<8x256xf32>, i32 -> vector<8x256xf32>
    %c20 = arith.constant 20 : index
    %c0_106 = arith.constant 0 : index
    %c0_107 = arith.constant 0 : index
    %166 = vector.load %arg5[%c20, %c0_106, %c0_107] : memref<25x8x8xf32, #tpu.memory_space<vmem>>, vector<1x8x8xf32>
    %167 = vector.shape_cast %166 : vector<1x8x8xf32> to vector<8x8xf32>
    %cst_108 = arith.constant dense<0.000000e+00> : vector<8x256xf32>
    %168 = tpu.matmul %167, %165, %cst_108 {dimension_numbers = #tpu.dot_dimension_numbers<[1], [0], [0], [1], [0, 0, 1, 1], [], []>} : vector<8x8xf32>, vector<8x256xf32>, vector<8x256xf32> -> vector<8x256xf32>
    %c20_109 = arith.constant 20 : index
    %c0_110 = arith.constant 0 : index
    %169 = vector.load %arg4[%c20_109, %c0_110] : memref<25x256xf32, #tpu.memory_space<vmem>>, vector<1x256xf32>
    %170 = vector.broadcast %169 : vector<1x256xf32> to vector<8x256xf32>
    %171 = arith.mulf %168, %170 : vector<8x256xf32>
    %172 = arith.addf %164, %171 : vector<8x256xf32>
    %c241_i32 = arith.constant 241 : i32
    %173 = tpu.dynamic_rotate %2 by %c241_i32 dim 1 : vector<8x256xf32>, i32 -> vector<8x256xf32>
    %c21 = arith.constant 21 : index
    %c0_111 = arith.constant 0 : index
    %c0_112 = arith.constant 0 : index
    %174 = vector.load %arg5[%c21, %c0_111, %c0_112] : memref<25x8x8xf32, #tpu.memory_space<vmem>>, vector<1x8x8xf32>
    %175 = vector.shape_cast %174 : vector<1x8x8xf32> to vector<8x8xf32>
    %cst_113 = arith.constant dense<0.000000e+00> : vector<8x256xf32>
    %176 = tpu.matmul %175, %173, %cst_113 {dimension_numbers = #tpu.dot_dimension_numbers<[1], [0], [0], [1], [0, 0, 1, 1], [], []>} : vector<8x8xf32>, vector<8x256xf32>, vector<8x256xf32> -> vector<8x256xf32>
    %c21_114 = arith.constant 21 : index
    %c0_115 = arith.constant 0 : index
    %177 = vector.load %arg4[%c21_114, %c0_115] : memref<25x256xf32, #tpu.memory_space<vmem>>, vector<1x256xf32>
    %178 = vector.broadcast %177 : vector<1x256xf32> to vector<8x256xf32>
    %179 = arith.mulf %176, %178 : vector<8x256xf32>
    %180 = arith.addf %172, %179 : vector<8x256xf32>
    %c240_i32 = arith.constant 240 : i32
    %181 = tpu.dynamic_rotate %2 by %c240_i32 dim 1 : vector<8x256xf32>, i32 -> vector<8x256xf32>
    %c22 = arith.constant 22 : index
    %c0_116 = arith.constant 0 : index
    %c0_117 = arith.constant 0 : index
    %182 = vector.load %arg5[%c22, %c0_116, %c0_117] : memref<25x8x8xf32, #tpu.memory_space<vmem>>, vector<1x8x8xf32>
    %183 = vector.shape_cast %182 : vector<1x8x8xf32> to vector<8x8xf32>
    %cst_118 = arith.constant dense<0.000000e+00> : vector<8x256xf32>
    %184 = tpu.matmul %183, %181, %cst_118 {dimension_numbers = #tpu.dot_dimension_numbers<[1], [0], [0], [1], [0, 0, 1, 1], [], []>} : vector<8x8xf32>, vector<8x256xf32>, vector<8x256xf32> -> vector<8x256xf32>
    %c22_119 = arith.constant 22 : index
    %c0_120 = arith.constant 0 : index
    %185 = vector.load %arg4[%c22_119, %c0_120] : memref<25x256xf32, #tpu.memory_space<vmem>>, vector<1x256xf32>
    %186 = vector.broadcast %185 : vector<1x256xf32> to vector<8x256xf32>
    %187 = arith.mulf %184, %186 : vector<8x256xf32>
    %188 = arith.addf %180, %187 : vector<8x256xf32>
    %c239_i32 = arith.constant 239 : i32
    %189 = tpu.dynamic_rotate %2 by %c239_i32 dim 1 : vector<8x256xf32>, i32 -> vector<8x256xf32>
    %c23 = arith.constant 23 : index
    %c0_121 = arith.constant 0 : index
    %c0_122 = arith.constant 0 : index
    %190 = vector.load %arg5[%c23, %c0_121, %c0_122] : memref<25x8x8xf32, #tpu.memory_space<vmem>>, vector<1x8x8xf32>
    %191 = vector.shape_cast %190 : vector<1x8x8xf32> to vector<8x8xf32>
    %cst_123 = arith.constant dense<0.000000e+00> : vector<8x256xf32>
    %192 = tpu.matmul %191, %189, %cst_123 {dimension_numbers = #tpu.dot_dimension_numbers<[1], [0], [0], [1], [0, 0, 1, 1], [], []>} : vector<8x8xf32>, vector<8x256xf32>, vector<8x256xf32> -> vector<8x256xf32>
    %c23_124 = arith.constant 23 : index
    %c0_125 = arith.constant 0 : index
    %193 = vector.load %arg4[%c23_124, %c0_125] : memref<25x256xf32, #tpu.memory_space<vmem>>, vector<1x256xf32>
    %194 = vector.broadcast %193 : vector<1x256xf32> to vector<8x256xf32>
    %195 = arith.mulf %192, %194 : vector<8x256xf32>
    %196 = arith.addf %188, %195 : vector<8x256xf32>
    %c238_i32 = arith.constant 238 : i32
    %197 = tpu.dynamic_rotate %2 by %c238_i32 dim 1 : vector<8x256xf32>, i32 -> vector<8x256xf32>
    %c24 = arith.constant 24 : index
    %c0_126 = arith.constant 0 : index
    %c0_127 = arith.constant 0 : index
    %198 = vector.load %arg5[%c24, %c0_126, %c0_127] : memref<25x8x8xf32, #tpu.memory_space<vmem>>, vector<1x8x8xf32>
    %199 = vector.shape_cast %198 : vector<1x8x8xf32> to vector<8x8xf32>
    %cst_128 = arith.constant dense<0.000000e+00> : vector<8x256xf32>
    %200 = tpu.matmul %199, %197, %cst_128 {dimension_numbers = #tpu.dot_dimension_numbers<[1], [0], [0], [1], [0, 0, 1, 1], [], []>} : vector<8x8xf32>, vector<8x256xf32>, vector<8x256xf32> -> vector<8x256xf32>
    %c24_129 = arith.constant 24 : index
    %c0_130 = arith.constant 0 : index
    %201 = vector.load %arg4[%c24_129, %c0_130] : memref<25x256xf32, #tpu.memory_space<vmem>>, vector<1x256xf32>
    %202 = vector.broadcast %201 : vector<1x256xf32> to vector<8x256xf32>
    %203 = arith.mulf %200, %202 : vector<8x256xf32>
    %204 = arith.addf %196, %203 : vector<8x256xf32>
    %c0_131 = arith.constant 0 : index
    %c0_132 = arith.constant 0 : index
    %205 = vector.load %arg6[%c0_131, %c0_132] : memref<8x1xf32, #tpu.memory_space<vmem>>, vector<8x1xf32>
    %206 = vector.broadcast %205 : vector<8x1xf32> to vector<8x256xf32>
    %207 = arith.addf %204, %206 : vector<8x256xf32>
    %cst_133 = arith.constant 0.000000e+00 : f32
    %208 = vector.broadcast %cst_133 : f32 to vector<8x256xf32>
    %209 = arith.maximumf %207, %208 : vector<8x256xf32>
    %210 = vector.broadcast %4 : vector<1x256xf32> to vector<8x256xf32>
    %211 = arith.mulf %209, %210 : vector<8x256xf32>
    %c0_134 = arith.constant 0 : index
    %c0_135 = arith.constant 0 : index
    %212 = vector.load %arg7[%c0_134, %c0_135] : memref<4x8xf32, #tpu.memory_space<vmem>>, vector<4x8xf32>
    %cst_136 = arith.constant dense<0.000000e+00> : vector<4x256xf32>
    %213 = tpu.matmul %212, %211, %cst_136 {dimension_numbers = #tpu.dot_dimension_numbers<[1], [0], [0], [1], [0, 0, 1, 1], [], []>} : vector<4x8xf32>, vector<8x256xf32>, vector<4x256xf32> -> vector<4x256xf32>
    %c0_137 = arith.constant 0 : index
    %c0_138 = arith.constant 0 : index
    %c0_139 = arith.constant 0 : index
    %214 = vector.load %arg8[%c0_137, %c0_138, %c0_139] : memref<1x4x256xf32, #tpu.memory_space<vmem>>, vector<1x4x256xf32>
    %215 = vector.shape_cast %214 : vector<1x4x256xf32> to vector<4x256xf32>
    %216 = vector.shape_cast %213 : vector<4x256xf32> to vector<1x4x256xf32>
    tpu.vector_store %arg8[%c0_137, %c0_138, %c0_139], %216 {strides = array<i32>} : memref<1x4x256xf32, #tpu.memory_space<vmem>>, vector<1x4x256xf32>,
    %cst_140 = arith.constant dense<0.000000e+00> : vector<4xf32>
    %217 = vector.multi_reduction <add>, %213, %cst_140 [1] : vector<4x256xf32> to vector<4xf32>
    %218 = vector.shape_cast %217 : vector<4xf32> to vector<4x1xf32>
    %c0_141 = arith.constant 0 : index
    %c0_142 = arith.constant 0 : index
    %c0_143 = arith.constant 0 : index
    %c0_144 = arith.constant 0 : index
    %219 = vector.load %arg9[%c0_141, %c0_142, %c0_143, %c0_144] : memref<1x1x4x3xf32, #tpu.memory_space<vmem>>, vector<1x1x4x1xf32>
    %220 = vector.shape_cast %219 : vector<1x1x4x1xf32> to vector<4x1xf32>
    %221 = vector.shape_cast %218 : vector<4x1xf32> to vector<1x1x4x1xf32>
    tpu.vector_store %arg9[%c0_141, %c0_142, %c0_143, %c0_144], %221 {strides = array<i32>} : memref<1x1x4x3xf32, #tpu.memory_space<vmem>>, vector<1x1x4x1xf32>,
    %222 = arith.mulf %213, %213 : vector<4x256xf32>
    %cst_145 = arith.constant dense<0.000000e+00> : vector<4xf32>
    %223 = vector.multi_reduction <add>, %222, %cst_145 [1] : vector<4x256xf32> to vector<4xf32>
    %224 = vector.shape_cast %223 : vector<4xf32> to vector<4x1xf32>
    %c0_146 = arith.constant 0 : index
    %c0_147 = arith.constant 0 : index
    %c0_148 = arith.constant 0 : index
    %c1_149 = arith.constant 1 : index
    %225 = vector.load %arg9[%c0_146, %c0_147, %c0_148, %c1_149] : memref<1x1x4x3xf32, #tpu.memory_space<vmem>>, vector<1x1x4x1xf32>
    %226 = vector.shape_cast %225 : vector<1x1x4x1xf32> to vector<4x1xf32>
    %227 = vector.shape_cast %224 : vector<4x1xf32> to vector<1x1x4x1xf32>
    tpu.vector_store %arg9[%c0_146, %c0_147, %c0_148, %c1_149], %227 {strides = array<i32>} : memref<1x1x4x3xf32, #tpu.memory_space<vmem>>, vector<1x1x4x1xf32>,
    %cst_150 = arith.constant dense<0.000000e+00> : vector<1xf32>
    %228 = vector.multi_reduction <add>, %4, %cst_150 [1] : vector<1x256xf32> to vector<1xf32>
    %229 = vector.shape_cast %228 : vector<1xf32> to vector<1x1xf32>
    %230 = vector.shape_cast %229 : vector<1x1xf32> to vector<1x1xf32>
    %231 = vector.broadcast %230 : vector<1x1xf32> to vector<4x1xf32>
    %c0_151 = arith.constant 0 : index
    %c0_152 = arith.constant 0 : index
    %c0_153 = arith.constant 0 : index
    %c2_154 = arith.constant 2 : index
    %232 = vector.load %arg9[%c0_151, %c0_152, %c0_153, %c2_154] : memref<1x1x4x3xf32, #tpu.memory_space<vmem>>, vector<1x1x4x1xf32>
    %233 = vector.shape_cast %232 : vector<1x1x4x1xf32> to vector<4x1xf32>
    %234 = vector.shape_cast %231 : vector<4x1xf32> to vector<1x1x4x1xf32>
    tpu.vector_store %arg9[%c0_151, %c0_152, %c0_153, %c2_154], %234 {strides = array<i32>} : memref<1x1x4x3xf32, #tpu.memory_space<vmem>>, vector<1x1x4x1xf32>,
    return
  }
  func.func @transform_0(%arg0: i32, %arg1: i32) -> (i32, i32, i32) {
    %c0_i32 = arith.constant 0 : i32
    %c0_i32_0 = arith.constant 0 : i32
    return %arg0, %c0_i32, %arg1 : i32, i32, i32
  }
  func.func @transform_1(%arg0: i32, %arg1: i32) -> (i32, i32, i32) {
    %c0_i32 = arith.constant 0 : i32
    %c0_i32_0 = arith.constant 0 : i32
    return %arg0, %c0_i32, %arg1 : i32, i32, i32
  }
  func.func @transform_2(%arg0: i32, %arg1: i32) -> (i32, i32) {
    %c0_i32 = arith.constant 0 : i32
    %c0_i32_0 = arith.constant 0 : i32
    %c0_i32_1 = arith.constant 0 : i32
    return %c0_i32, %c0_i32_0 : i32, i32
  }
  func.func @transform_3(%arg0: i32, %arg1: i32) -> (i32, i32, i32) {
    %c0_i32 = arith.constant 0 : i32
    %c0_i32_0 = arith.constant 0 : i32
    %c0_i32_1 = arith.constant 0 : i32
    %c0_i32_2 = arith.constant 0 : i32
    return %c0_i32, %c0_i32_0, %c0_i32_1 : i32, i32, i32
  }
  func.func @transform_4(%arg0: i32, %arg1: i32) -> (i32, i32) {
    %c0_i32 = arith.constant 0 : i32
    %c0_i32_0 = arith.constant 0 : i32
    %c0_i32_1 = arith.constant 0 : i32
    return %c0_i32, %c0_i32_0 : i32, i32
  }
  func.func @transform_5(%arg0: i32, %arg1: i32) -> (i32, i32) {
    %c0_i32 = arith.constant 0 : i32
    %c0_i32_0 = arith.constant 0 : i32
    %c0_i32_1 = arith.constant 0 : i32
    return %c0_i32, %c0_i32_0 : i32, i32
  }
  func.func @transform_6(%arg0: i32, %arg1: i32) -> (i32, i32, i32) {
    %c0_i32 = arith.constant 0 : i32
    %c0_i32_0 = arith.constant 0 : i32
    return %arg0, %c0_i32, %arg1 : i32, i32, i32
  }
  func.func @transform_7(%arg0: i32, %arg1: i32) -> (i32, i32, i32, i32) {
    %c0_i32 = arith.constant 0 : i32
    %c0_i32_0 = arith.constant 0 : i32
    %c0_i32_1 = arith.constant 0 : i32
    return %arg0, %arg1, %c0_i32, %c0_i32_0 : i32, i32, i32, i32
  }
}

</mosaic_0001>

<bundles_post_ra>
// kernel: tpu_custom_call.1
= control target key start
LH: loop header
LB: loop body
LE: loop exit
PB: predicated region body
PF: predicated region fallthrough
CT: control target
= control target key end

     0   :  { %13 = vsyncpa [#allocation3], 0  ;;  %s4060_s0 = inlined_call_operand.vmem [shape: bf16[2,8,256], index: 0, kind: input, shape index: {}]   ;;  %s4061_s1 = inlined_call_operand.vmem [shape: f32[2,1,256], index: 1, kind: input, shape index: {}]   ;;  %s4062_s2 = inlined_call_operand.vmem [shape: f32[25,256], index: 2, kind: input, shape index: {}]   ;;  %s4063_s3 = inlined_call_operand.vmem [shape: f32[25,8,8], index: 3, kind: input, shape index: {}]   ;;  %s4064_s4 = inlined_call_operand.vmem [shape: f32[8,1], index: 4, kind: input, shape index: {}]   ;;  %s4065_s5 = inlined_call_operand.vmem [shape: f32[4,8], index: 5, kind: input, shape index: {}]   ;;  %s4066_s6 = inlined_call_operand.hbm [shape: f32[2,4,256], index: 6, kind: output, shape index: {0}]   ;;  %s4067_s7 = inlined_call_operand.vmem [shape: f32[2,1,4,3], index: 7, kind: output, shape index: {1}]  }
   0x1   :  { %15 = vsyncpa [#allocation3 + $0x1], 0  ;;  %s3577_s24 = smov 0   ;;  %s3579_s25 = smov 0  }
   0x2   :  { %s3581_s26 = smov 0   ;;  %s3583_s27 = smov 0  }
   0x3   :  { %s3585_s28 = smov 0   ;;  %s3587_s29 = smov 0  }
   0x4 LB: > { %s3139_s30 = sadd.s32 4294967295, %s3508_s29   ;;  %s3140_s8 = sadd.s32 4294967294, %s3508_s29   ;;  %s3508_s29 = sphi %s3587_s29, %s21_s29   ;;  %s3504_s28 = sphi %s3585_s28, %s4074_s28   ;;  %s3500_s27 = sphi %s3583_s27, %s4073_s27   ;;  %s3496_s26 = sphi %s3581_s26, %s4072_s26   ;;  %s3492_s25 = sphi %s3579_s25, %s4071_s25   ;;  %s3488_s24 = sphi %s3577_s24, %s4070_s24  }
   0x5   : > { %s33_s9 = sadd.s32 1, %s3504_s28  ;;  %s182_s10 = sadd.s32 1, %s3496_s26 }
   0x6   : > { %p35_p0 = scmp.ge.s32.totalorder %s33_s9, 2  ;;  %p192_p1 = scmp.ne.s32.totalorder %s3496_s26, %s3492_s25 }
   0x7   : > { %p193_p2 = scmp.eq.s32.totalorder %s3139_s30, 1  ;;  %p198_p3 = scmp.ne.s32.totalorder %s3492_s25, %s3488_s24 }
   0x8   : > { %s4076_s9 = smov (%p35_p0, %s33_s9), 0  ;;  %p199_p5 = scmp.eq.s32.totalorder %s3140_s8, 1 }
   0x9   : > { %p3617_p4 = por %p193_p2, %p192_p1  ;;  %s177_s12 = ssub.s32 %s3504_s28, %s4076_s9 }
   0xa   : > { %p3143_p6 = scmp.ge.s32.totalorder %s3508_s29, 1  ;;  %p180_p7 = scmp.eq.s32.totalorder %s177_s12, 0 }
   0xb   : > { %p3624_p8 = por %p199_p5, %p198_p3  ;;  %p282_p9 = scmp.lt.s32.totalorder %s3508_s29, 3 }
   0xc   : > { %s3630_s14 = scalar_select %p180_p7, %s3496_s26, %s182_s10  }
   0xd   : > { %p283_p10 = pnand %p3143_p6, %p282_p9 }
   0xe   : > { %p334_p11 = scmp.lt.s32.totalorder (!%p283_p10), %s3500_s27, 1  ;;  %s3511_s20 = smov (!%p283_p10), 18  }
   0xf   : > { %286 = sbr.rel (%p283_p10) target bundleno = 748 (0x2ec), region = 44  ;;  %s3512_s21 = smov (!%p283_p10), 16  }
  0x10   : > { %s3513_s22 = smov (!%p283_p10), 17   ;;  %s3514_s23 = smov (!%p283_p10), 15  }
  0x11   : > { %s3515_s30 = smov (!%p283_p10), 14   ;;  %s3516_s8 = smov (!%p283_p10), 10  }
  0x12   : > { %s3517_s10 = smov (!%p283_p10), 9   ;;  %s3518_s12 = smov (!%p283_p10), 8  }
  0x13   : > { %s3520_s17 = smov (!%p283_p10), 6   ;;  %s3521_s18 = smov (!%p283_p10), 2  }
  0x14   : > { %s3634_s15 = scalar_select %p334_p11, %s3500_s27, 1  ;;  %v3510_v0 = vmov 0.0   ;;  %v3533_v5 = vmov 0   ;;  %v2858_v6 = vld [vmem:[%s4064_s4] sm:$0xff]  ;;  %v368_v7 = vlaneseq  ;;  %vm374_vm2 = vcmask 64512   ;;  %v3150_v28 = vld [vmem:[%s4063_s3 + $0x8] sm:$0xff] }
  0x15   : > { %442 = vmatprep.mubr.f32.mxu0 %v3510_v0  ;;  %541 = vmatprep.mubr.f32.mxu1 %v3510_v0  ;;  %v373_v17 = vld [vmem:[%s4063_s3] sm:$0xff]  ;;  %v3153_v29 = vld [vmem:[%s4063_s3 + $0x10] sm:$0xff]  ;;  %v3156_v40 = vld [vmem:[%s4063_s3 + $0x18] sm:$0xff] }
  0x16   : > { %s3228_s16 = sshll.u32 %s3634_s15, 3  ;;  %3431 = vset.pattern.permute.xlu0 %v3533_v5  ;;  %v3654_v8 = vand.u32 127, %v368_v7  ;;  %v3159_v41 = vld [vmem:[%s4063_s3 + $0x20] sm:$0xff]  ;;  %v3162_v52 = vld [vmem:[%s4063_s3 + $0x28] sm:$0xff]  ;;  %v3165_v53 = vld [vmem:[%s4063_s3 + $0x30] sm:$0xff] }
  0x17   : > { %s341_s19 = scalar_lea.vmem %s4060_s0, %s3228_s16  ;;  %s3519_s16 = smov 7   ;;  %v3171_v5 = vld [vmem:[%s4063_s3 + $0x40] sm:$0xff] }
  0x18   : > { %v3642_v1 = vld [vmem:[%s341_s19] sm:$0xff]  ;;  %s3522_s19 = smov 1   ;;  %vm370_vm0 = vcmp.lt.s32.totalorder %v3654_v8, 18  ;;  %vm569_vm1 = vcmp.lt.s32.totalorder %v3654_v8, 16  ;;  %vm469_vm3 = vcmp.lt.s32.totalorder %v3654_v8, 17  ;;  %vm669_vm4 = vcmp.lt.s32.totalorder %v3654_v8, 15 }
  0x19   : > { %v361_v2 = vunpack.c.l.bf16 %v3642_v1  ;;  %v362_v3 = vunpack.c.h.bf16 %v3642_v1  ;;  %vm769_vm5 = vcmp.lt.s32.totalorder %v3654_v8, 14  ;;  %vm869_vm6 = vcmp.lt.s32.totalorder %v3654_v8, 10  ;;  %v3186_v1 = vld [vmem:[%s4063_s3 + $0x68] sm:$0xff] }
  0x1a   : > { %vm969_vm7 = vcmp.lt.s32.totalorder %v3654_v8, 9  ;;  %vm1069_vm8 = vcmp.lt.s32.totalorder %v3654_v8, 8  ;;  %vm1169_vm9 = vcmp.lt.s32.totalorder %v3654_v8, 7  ;;  %vm1269_vm10 = vcmp.lt.s32.totalorder %v3654_v8, 6 }
  0x1b   : > { %v3311_v4 = vpack.i.bf16 %v362_v3, %v361_v2  ;;  %vm1369_vm11 = vcmp.lt.s32.totalorder %v3654_v8, 2  ;;  %vm1469_vm12 = vcmp.lt.s32.totalorder %v3654_v8, 1  ;;  %vm1662_vm13 = vcmp.lt.s32.totalorder %v3654_v8, 127 }
  0x1c   : > { %vm1762_vm14 = vcmp.lt.s32.totalorder %v3654_v8, 126  ;;  %vm1862_vm15 = vcmp.lt.s32.totalorder %v3654_v8, 122 }
  0x1d   : > { %3312 = vrot.lane.b32.xlu0 %v3311_v4, %s3511_s20  ;;  %3322 = vrot.lane.b32.xlu1 %v3311_v4, %s3512_s21  ;;  %s3523_s20 = smov 127   ;;  %s3524_s21 = smov 126  }
  0x21   : > { %3317 = vrot.lane.b32.xlu0 %v3311_v4, %s3513_s22  ;;  %3327 = vrot.lane.b32.xlu1 %v3311_v4, %s3514_s23  ;;  %s3525_s22 = smov 122   ;;  %s3526_s23 = smov 121  }
  0x25   : > { %3332 = vrot.lane.b32.xlu0 %v3311_v4, %s3515_s30  ;;  %3337 = vrot.lane.b32.xlu1 %v3311_v4, %s3516_s8  ;;  %s3527_s30 = smov 120   ;;  %s3528_s8 = smov 119  }
  0x29   : > { %3342 = vrot.lane.b32.xlu0 %v3311_v4, %s3517_s10  ;;  %3347 = vrot.lane.b32.xlu1 %v3311_v4, %s3518_s12  ;;  %s3529_s10 = smov 118   ;;  %s3530_s12 = smov 114  }
  0x2d   : > { %3352 = vrot.lane.b32.xlu0 %v3311_v4, %s3519_s16  ;;  %3357 = vrot.lane.b32.xlu1 %v3311_v4, %s3520_s17  ;;  %s3531_s16 = smov 113   ;;  %s3532_s17 = smov 112  }
  0x31   : > { %3362 = vrot.lane.b32.xlu0 %v3311_v4, %s3521_s18  ;;  %3367 = vrot.lane.b32.xlu1 %v3311_v4, %s3522_s19  ;;  %s3534_s18 = smov 111   ;;  %s3535_s19 = smov 110  }
  0x35   : > { %3372 = vrot.lane.b32.xlu0 %v3311_v4, %s3523_s20  ;;  %3377 = vrot.lane.b32.xlu1 %v3311_v4, %s3524_s21  ;;  %s321_s20 = sand.u32 1, %s3492_s25  }
  0x36   : > { %s3144_s21 = sshll.u32 %s321_s20, 3 }
  0x39   : > { %3382 = vrot.lane.b32.xlu0 %v3311_v4, %s3525_s22  ;;  %3387 = vrot.lane.b32.xlu1 %v3311_v4, %s3526_s23  ;;  %s323_s22 = scalar_lea.vmem [#allocation2], %s3144_s21  ;;  %s3229_s23 = sshll.u32 %s3500_s27, 7 }
  0x3d   : > { %3392 = vrot.lane.b32.xlu0 %v3311_v4, %s3527_s30  ;;  %3397 = vrot.lane.b32.xlu1 %v3311_v4, %s3528_s8  ;;  %s3014_s30 = sshll.u32 %s323_s22, 4  ;;  %s3015_s30 = int_to_ptr.vmem [resolvable:$true] %s3014_s30 }
  0x41   : > { %3402 = vrot.lane.b32.xlu0 %v3311_v4, %s3529_s10  ;;  %3407 = vrot.lane.b32.xlu1 %v3311_v4, %s3530_s12  ;;  %s3147_s10 = sshll.u32 %s3634_s15, 1  ;;  %s3012_s12 = scalar_lea.hbm %s4066_s6, %s3229_s23 }
  0x45   : > { %3412 = vrot.lane.b32.xlu0 %v3311_v4, %s3531_s16  ;;  %3417 = vrot.lane.b32.xlu1 %v3311_v4, %s3532_s17  ;;  %s350_s17 = scalar_lea.vmem %s4061_s1, %s3147_s10  ;;  %s2991_s16 = scalar_lea.sflag [#allocation3], %s321_s20 }
  0x49   : > { %3422 = vrot.lane.b32.xlu0 %v3311_v4, %s3534_s18  ;;  %3427 = vrot.lane.b32.xlu1 %v3311_v4, %s3535_s19  ;;  %v3168_v4 = vld [vmem:[%s4063_s3 + $0x38] sm:$0xff]  ;;  %s3536_s18 = smov [#allocation2]  }
  0x4a   : > { %s3436_s19 = sshll.u32 %s3536_s18, 4  ;;  %s3437_s19 = int_to_ptr.vmem [resolvable:$false] %s3436_s19 }
  0x4b   : > { %s3438_s21 = scalar_lea.vmem %s3437_s19, 256  ;;  %p3439_p1 = scmp.lt.s32.totalorder %s3015_s30, %s3437_s19 }
  0x4d   : > { %2861 = vperm.xlu0 %3431, %v2858_v6  }
  0x8f   : > { %v3313_v9 = vpop.permute.xlu0 %3312  ;;  %v3323_v10 = vpop.permute.xlu1 %3322 }
  0x90   : > { %v3315_v11 = vunpack.i.h.bf16 %v3313_v9  ;;  %v3314_v12 = vunpack.i.l.bf16 %v3313_v9  ;;  %v3325_v13 = vunpack.i.h.bf16 %v3323_v10  ;;  %v3324_v14 = vunpack.i.l.bf16 %v3323_v10 }
  0x92   : > { %v371_v15 = vsel %vm370_vm0, %v3314_v12, %v3315_v11  ;;  %v372_v16 = vsel %vm370_vm0, %v3315_v11, %v3314_v12  ;;  %v570_v18 = vsel %vm569_vm1, %v3324_v14, %v3325_v13  ;;  %v571_v21 = vsel %vm569_vm1, %v3325_v13, %v3324_v14 }
  0x93   : > { %v3318_v19 = vpop.permute.xlu0 %3317  ;;  %408 = vmatprep.subr.mxu0 %v371_v15  ;;  %v3328_v20 = vpop.permute.xlu1 %3327  ;;  %vm1962_vm0 = vcmp.lt.s32.totalorder %v3654_v8, 121  ;;  %vm2062_vm1 = vcmp.lt.s32.totalorder %v3654_v8, 120 }
  0x94   : > { %v3320_v22 = vunpack.i.h.bf16 %v3318_v19  ;;  %v3319_v23 = vunpack.i.l.bf16 %v3318_v19  ;;  %409 = vmatpush1.msra.mxu0 %v372_v16  ;;  %v3330_v24 = vunpack.i.h.bf16 %v3328_v20  ;;  %v3329_v25 = vunpack.i.l.bf16 %v3328_v20  ;;  %v3177_v19 = vld [vmem:[%s4063_s3 + $0x50] sm:$0xff] }
  0x95   : > { %3149 = vmatmul.mubr.msk.f32.vlgmr.msra.gmra.mxu0 %vm374_vm2, %v373_v17  ;;  %607 = vmatprep.subr.mxu0 %v570_v18  ;;  %v3174_v18 = vld [vmem:[%s4063_s3 + $0x48] sm:$0xff] }
  0x96   : > { %v470_v26 = vsel %vm469_vm3, %v3319_v23, %v3320_v22  ;;  %608 = vmatpush1.msra.mxu0 %v571_v21  ;;  %v471_v27 = vsel %vm469_vm3, %v3320_v22, %v3319_v23  ;;  %641 = vmatprep.mubr.f32.mxu0 %v3510_v0  ;;  %v670_v32 = vsel %vm669_vm4, %v3329_v25, %v3330_v24  ;;  %vm2162_vm3 = vcmp.lt.s32.totalorder %v3654_v8, 119 }
  0x97   : > { %v3333_v30 = vpop.permute.xlu0 %3332  ;;  %507 = vmatprep.subr.mxu1 %v470_v26  ;;  %v3338_v31 = vpop.permute.xlu1 %3337  ;;  %v671_v33 = vsel %vm669_vm4, %v3330_v24, %v3329_v25  ;;  %vm2262_vm4 = vcmp.lt.s32.totalorder %v3654_v8, 118 }
  0x98   : > { %v3335_v34 = vunpack.i.h.bf16 %v3333_v30  ;;  %v3334_v35 = vunpack.i.l.bf16 %v3333_v30  ;;  %508 = vmatpush1.msra.mxu1 %v471_v27  ;;  %v3340_v36 = vunpack.i.h.bf16 %v3338_v31  ;;  %v3339_v37 = vunpack.i.l.bf16 %v3338_v31 }
  0x99   : > { %3151 = vmatmul.mubr.msk.f32.vlgmr.msra.gmra.mxu1 %vm374_vm2, %v3150_v28  ;;  %3154 = vmatmul.mubr.msk.f32.vlgmr.msra.gmra.mxu0 %vm374_vm2, %v3153_v29  ;;  %v3180_v28 = vld [vmem:[%s4063_s3 + $0x58] sm:$0xff]  ;;  %v3183_v29 = vld [vmem:[%s4063_s3 + $0x60] sm:$0xff] }
  0x9a   : > { %707 = vmatprep.subr.mxu1 %v670_v32  ;;  %v770_v38 = vsel %vm769_vm5, %v3334_v35, %v3335_v34  ;;  %741 = vmatprep.mubr.f32.mxu1 %v3510_v0  ;;  %v771_v39 = vsel %vm769_vm5, %v3335_v34, %v3334_v35  ;;  %v870_v44 = vsel %vm869_vm6, %v3339_v37, %v3340_v36  ;;  %vm2362_vm5 = vcmp.lt.s32.totalorder %v3654_v8, 114 }
  0x9b   : > { %v3343_v42 = vpop.permute.xlu0 %3342  ;;  %708 = vmatpush1.msra.mxu1 %v671_v33  ;;  %807 = vmatprep.subr.mxu0 %v770_v38  ;;  %v3348_v43 = vpop.permute.xlu1 %3347  ;;  %v871_v45 = vsel %vm869_vm6, %v3340_v36, %v3339_v37  ;;  %vm2462_vm6 = vcmp.lt.s32.totalorder %v3654_v8, 113 }
  0x9c   : > { %v3345_v46 = vunpack.i.h.bf16 %v3343_v42  ;;  %v3344_v47 = vunpack.i.l.bf16 %v3343_v42  ;;  %808 = vmatpush1.msra.mxu0 %v771_v39  ;;  %841 = vmatprep.mubr.f32.mxu0 %v3510_v0  ;;  %v3350_v48 = vunpack.i.h.bf16 %v3348_v43  ;;  %v3349_v49 = vunpack.i.l.bf16 %v3348_v43 }
  0x9d   : > { %3157 = vmatmul.mubr.msk.f32.vlgmr.msra.gmra.mxu1 %vm374_vm2, %v3156_v40  ;;  %3160 = vmatmul.mubr.msk.f32.vlgmr.msra.gmra.mxu0 %vm374_vm2, %v3159_v41 }
  0x9e   : > { %907 = vmatprep.subr.mxu1 %v870_v44  ;;  %v970_v50 = vsel %vm969_vm7, %v3344_v47, %v3345_v46  ;;  %941 = vmatprep.mubr.f32.mxu1 %v3510_v0  ;;  %v971_v51 = vsel %vm969_vm7, %v3345_v46, %v3344_v47  ;;  %v1070_v56 = vsel %vm1069_vm8, %v3349_v49, %v3350_v48  ;;  %vm2562_vm7 = vcmp.lt.s32.totalorder %v3654_v8, 112 }
  0x9f   : > { %v3353_v54 = vpop.permute.xlu0 %3352  ;;  %908 = vmatpush1.msra.mxu1 %v871_v45  ;;  %1007 = vmatprep.subr.mxu0 %v970_v50  ;;  %v3358_v55 = vpop.permute.xlu1 %3357  ;;  %v1071_v57 = vsel %vm1069_vm8, %v3350_v48, %v3349_v49  ;;  %v3192_v49 = vld [vmem:[%s4063_s3 + $0x78] sm:$0xff]  ;;  %v3195_v50 = vld [vmem:[%s4063_s3 + $0x80] sm:$0xff]  ;;  %vm2662_vm8 = vcmp.lt.s32.totalorder %v3654_v8, 111 }
  0xa0   : > { %v3355_v58 = vunpack.i.h.bf16 %v3353_v54  ;;  %v3354_v59 = vunpack.i.l.bf16 %v3353_v54  ;;  %1008 = vmatpush1.msra.mxu0 %v971_v51  ;;  %1041 = vmatprep.mubr.f32.mxu0 %v3510_v0  ;;  %v3360_v60 = vunpack.i.h.bf16 %v3358_v55  ;;  %v3359_v61 = vunpack.i.l.bf16 %v3358_v55 }
  0xa1   : > { %3163 = vmatmul.mubr.msk.f32.vlgmr.msra.gmra.mxu1 %vm374_vm2, %v3162_v52  ;;  %3166 = vmatmul.mubr.msk.f32.vlgmr.msra.gmra.mxu0 %vm374_vm2, %v3165_v53 }
  0xa2   : > { %1107 = vmatprep.subr.mxu1 %v1070_v56  ;;  %v1170_v62 = vsel %vm1169_vm9, %v3354_v59, %v3355_v58  ;;  %1141 = vmatprep.mubr.f32.mxu1 %v3510_v0  ;;  %v1171_v63 = vsel %vm1169_vm9, %v3355_v58, %v3354_v59  ;;  %v1270_v10 = vsel %vm1269_vm10, %v3359_v61, %v3360_v60  ;;  %vm2762_vm9 = vcmp.lt.s32.totalorder %v3654_v8, 110 }
  0xa3   : > { %v3363_v6 = vpop.permute.xlu0 %3362  ;;  %1108 = vmatpush1.msra.mxu1 %v1071_v57  ;;  %1207 = vmatprep.subr.mxu0 %v1170_v62  ;;  %v3368_v9 = vpop.permute.xlu1 %3367  ;;  %v1271_v11 = vsel %vm1269_vm10, %v3360_v60, %v3359_v61  ;;  %v3198_v61 = vld [vmem:[%s4063_s3 + $0x88] sm:$0xff]  ;;  %v3201_v62 = vld [vmem:[%s4063_s3 + $0x90] sm:$0xff]  ;;  %v452_v8 = vshrl.u32 %v368_v7, 7  ;;  %vm2978_vm10 = vcmask 1040384  }
  0xa4   : > { %v3365_v12 = vunpack.i.h.bf16 %v3363_v6  ;;  %v3364_v13 = vunpack.i.l.bf16 %v3363_v6  ;;  %1208 = vmatpush1.msra.mxu0 %v1171_v63  ;;  %1241 = vmatprep.mubr.f32.mxu0 %v3510_v0  ;;  %v3370_v14 = vunpack.i.h.bf16 %v3368_v9  ;;  %v3369_v15 = vunpack.i.l.bf16 %v3368_v9 }
  0xa5   : > { %3169 = vmatmul.mubr.msk.f32.vlgmr.msra.gmra.mxu1 %vm374_vm2, %v3168_v4  ;;  %3172 = vmatmul.mubr.msk.f32.vlgmr.msra.gmra.mxu0 %vm374_vm2, %v3171_v5 }
  0xa6   : > { %1307 = vmatprep.subr.mxu1 %v1270_v10  ;;  %v1370_v16 = vsel %vm1369_vm11, %v3364_v13, %v3365_v12  ;;  %1341 = vmatprep.mubr.f32.mxu1 %v3510_v0  ;;  %v1371_v17 = vsel %vm1369_vm11, %v3365_v12, %v3364_v13  ;;  %v1470_v21 = vsel %vm1469_vm12, %v3369_v15, %v3370_v14  ;;  %vm2961_vm11 = vcmask 1043456  }
  0xa7   : > { %1308 = vmatpush1.msra.mxu1 %v1271_v11  ;;  %1407 = vmatprep.subr.mxu0 %v1370_v16  ;;  %v3373_v20 = vpop.permute.xlu0 %3372  ;;  %v3378_v22 = vpop.permute.xlu1 %3377  ;;  %v1471_v23 = vsel %vm1469_vm12, %v3370_v14, %v3369_v15  ;;  %v3204_v15 = vld [vmem:[%s4063_s3 + $0x98] sm:$0xff]  ;;  %v3207_v16 = vld [vmem:[%s4063_s3 + $0xa0] sm:$0xff] }
  0xa8   : > { %1408 = vmatpush1.msra.mxu0 %v1371_v17  ;;  %1441 = vmatprep.mubr.f32.mxu0 %v3510_v0  ;;  %v3375_v24 = vunpack.i.h.bf16 %v3373_v20  ;;  %v3374_v25 = vunpack.i.l.bf16 %v3373_v20  ;;  %v3380_v26 = vunpack.i.h.bf16 %v3378_v22  ;;  %v3379_v27 = vunpack.i.l.bf16 %v3378_v22 }
  0xa9   : > { %3175 = vmatmul.mubr.msk.f32.vlgmr.msra.gmra.mxu1 %vm374_vm2, %v3174_v18  ;;  %3178 = vmatmul.mubr.msk.f32.vlgmr.msra.gmra.mxu0 %vm374_vm2, %v3177_v19 }
  0xaa   : > { %1507 = vmatprep.subr.mxu1 %v1470_v21  ;;  %1600 = vmatprep.subr.mxu0 %v362_v3  ;;  %v1664_v31 = vsel %vm1662_vm13, %v3375_v24, %v3374_v25  ;;  %v1663_v3 = vsel %vm1662_vm13, %v3374_v25, %v3375_v24  ;;  %v1764_v33 = vsel %vm1762_vm14, %v3380_v26, %v3379_v27 }
  0xab   : > { %1508 = vmatpush1.msra.mxu1 %v1471_v23  ;;  %1541 = vmatprep.mubr.f32.mxu1 %v3510_v0  ;;  %v3383_v30 = vpop.permute.xlu0 %3382  ;;  %v3388_v32 = vpop.permute.xlu1 %3387  ;;  %v1763_v38 = vsel %vm1762_vm14, %v3379_v27, %v3380_v26  ;;  %v3210_v27 = vld [vmem:[%s4063_s3 + $0xa8] sm:$0xff] }
  0xac   : > { %1601 = vmatpush1.msra.mxu0 %v361_v2  ;;  %1634 = vmatprep.mubr.f32.mxu0 %v3510_v0  ;;  %v3385_v34 = vunpack.i.h.bf16 %v3383_v30  ;;  %v3384_v35 = vunpack.i.l.bf16 %v3383_v30  ;;  %v3390_v36 = vunpack.i.h.bf16 %v3388_v32  ;;  %v3389_v37 = vunpack.i.l.bf16 %v3388_v32  ;;  %v3189_v2 = vld [vmem:[%s4063_s3 + $0x70] sm:$0xff] }
  0xad   : > { %3181 = vmatmul.mubr.msk.f32.vlgmr.msra.gmra.mxu1 %vm374_vm2, %v3180_v28  ;;  %3184 = vmatmul.mubr.msk.f32.vlgmr.msra.gmra.mxu0 %vm374_vm2, %v3183_v29  ;;  %v3213_v28 = vld [vmem:[%s4063_s3 + $0xb0] sm:$0xff] }
  0xae   : > { %1700 = vmatprep.subr.mxu1 %v1664_v31  ;;  %1800 = vmatprep.subr.mxu0 %v1764_v33  ;;  %v1864_v40 = vsel %vm1862_vm15, %v3385_v34, %v3384_v35  ;;  %v1863_v42 = vsel %vm1862_vm15, %v3384_v35, %v3385_v34  ;;  %v1964_v43 = vsel %vm1962_vm0, %v3390_v36, %v3389_v37  ;;  %v3219_v33 = vld [vmem:[%s4063_s3 + $0xc0] sm:$0xff]  ;;  %v3877_v34 = vsub.s32 0, %v452_v8 }
  0xaf   : > { %1701 = vmatpush1.msra.mxu1 %v1663_v3  ;;  %1734 = vmatprep.mubr.f32.mxu1 %v3510_v0  ;;  %v3393_v39 = vpop.permute.xlu0 %3392  ;;  %v3398_v41 = vpop.permute.xlu1 %3397  ;;  %v1963_v48 = vsel %vm1962_vm0, %v3389_v37, %v3390_v36  ;;  %v3216_v3 = vld [vmem:[%s4063_s3 + $0xb8] sm:$0xff]  ;;  %v449_v35 = vld [vmem:[%s4062_s2] ss:$8 sm:$0x3] }
  0xb0   : > { %1801 = vmatpush1.msra.mxu0 %v1763_v38  ;;  %1834 = vmatprep.mubr.f32.mxu0 %v3510_v0  ;;  %v3395_v44 = vunpack.i.h.bf16 %v3393_v39  ;;  %v3394_v45 = vunpack.i.l.bf16 %v3393_v39  ;;  %v3400_v46 = vunpack.i.h.bf16 %v3398_v41  ;;  %v3399_v47 = vunpack.i.l.bf16 %v3398_v41  ;;  %v3152_v36 = vld [vmem:[%s4062_s2 + $0x1] ss:$8 sm:$0x3]  ;;  %v3155_v37 = vld [vmem:[%s4062_s2 + $0x2] ss:$8 sm:$0x3] }
  0xb1   : > { %3187 = vmatmul.mubr.msk.f32.vlgmr.msra.gmra.mxu1 %vm374_vm2, %v3186_v1  ;;  %3190 = vmatmul.mubr.msk.f32.vlgmr.msra.gmra.mxu0 %vm374_vm2, %v3189_v2  ;;  %v3888_v38 = vsub.s32 1, %v452_v8  ;;  %v554_v7 = vrot.slane %v3152_v36, %v3877_v34  ;;  %v654_v2 = vrot.slane %v3155_v37, %v3877_v34  ;;  %v3158_v39 = vld [vmem:[%s4062_s2 + $0x3] ss:$8 sm:$0x3] }
  0xb2   : > { %1900 = vmatprep.subr.mxu1 %v1864_v40  ;;  %2000 = vmatprep.subr.mxu0 %v1964_v43  ;;  %v2064_v52 = vsel %vm2062_vm1, %v3395_v44, %v3394_v45  ;;  %v2063_v54 = vsel %vm2062_vm1, %v3394_v45, %v3395_v44  ;;  %v2164_v55 = vsel %vm2162_vm3, %v3400_v46, %v3399_v47  ;;  %v3161_v41 = vld [vmem:[%s4062_s2 + $0x4] ss:$8 sm:$0x3] }
  0xb3   : > { %1901 = vmatpush1.msra.mxu1 %v1863_v42  ;;  %1934 = vmatprep.mubr.f32.mxu1 %v3510_v0  ;;  %v3403_v51 = vpop.permute.xlu0 %3402  ;;  %v3408_v53 = vpop.permute.xlu1 %3407  ;;  %v2163_v60 = vsel %vm2162_vm3, %v3399_v47, %v3400_v46  ;;  %v458_v42 = vrot.slane %v449_v35, %v3888_v38  ;;  %v558_v43 = vrot.slane %v3152_v36, %v3888_v38 }
  0xb4   : > { %2001 = vmatpush1.msra.mxu0 %v1963_v48  ;;  %2034 = vmatprep.mubr.f32.mxu0 %v3510_v0  ;;  %v3405_v56 = vunpack.i.h.bf16 %v3403_v51  ;;  %v3404_v57 = vunpack.i.l.bf16 %v3403_v51  ;;  %v3410_v58 = vunpack.i.h.bf16 %v3408_v53  ;;  %v3409_v59 = vunpack.i.l.bf16 %v3408_v53  ;;  %v3167_v53 = vld [vmem:[%s4062_s2 + $0x6] ss:$8 sm:$0x3] }
  0xb5   : > { %3193 = vmatmul.mubr.msk.f32.vlgmr.msra.gmra.mxu1 %vm374_vm2, %v3192_v49  ;;  %3196 = vmatmul.mubr.msk.f32.vlgmr.msra.gmra.mxu0 %vm374_vm2, %v3195_v50  ;;  %v658_v46 = vrot.slane %v3155_v37, %v3888_v38  ;;  %v754_v47 = vrot.slane %v3158_v39, %v3877_v34  ;;  %v854_v51 = vrot.slane %v3161_v41, %v3877_v34 }
  0xb6   : > { %2100 = vmatprep.subr.mxu1 %v2064_v52  ;;  %2200 = vmatprep.subr.mxu0 %v2164_v55  ;;  %v2264_v4 = vsel %vm2262_vm4, %v3405_v56, %v3404_v57  ;;  %v2263_v6 = vsel %vm2262_vm4, %v3404_v57, %v3405_v56  ;;  %v2364_v9 = vsel %vm2362_vm5, %v3410_v58, %v3409_v59  ;;  %v3164_v52 = vld [vmem:[%s4062_s2 + $0x5] ss:$8 sm:$0x3] }
  0xb7   : > { %2101 = vmatpush1.msra.mxu1 %v2063_v54  ;;  %2134 = vmatprep.mubr.f32.mxu1 %v3510_v0  ;;  %v3413_v63 = vpop.permute.xlu0 %3412  ;;  %v3418_v5 = vpop.permute.xlu1 %3417  ;;  %v2363_v14 = vsel %vm2362_vm5, %v3409_v59, %v3410_v58  ;;  %v758_v59 = vrot.slane %v3158_v39, %v3888_v38 }
  0xb8   : > { %2201 = vmatpush1.msra.mxu0 %v2163_v60  ;;  %2234 = vmatprep.mubr.f32.mxu0 %v3510_v0  ;;  %v3415_v10 = vunpack.i.h.bf16 %v3413_v63  ;;  %v3414_v11 = vunpack.i.l.bf16 %v3413_v63  ;;  %v3420_v12 = vunpack.i.h.bf16 %v3418_v5  ;;  %v3419_v13 = vunpack.i.l.bf16 %v3418_v5 }
  0xb9   : > { %3199 = vmatmul.mubr.msk.f32.vlgmr.msra.gmra.mxu1 %vm374_vm2, %v3198_v61  ;;  %3202 = vmatmul.mubr.msk.f32.vlgmr.msra.gmra.mxu0 %vm374_vm2, %v3201_v62  ;;  %v858_v63 = vrot.slane %v3161_v41, %v3888_v38  ;;  %v1054_v5 = vrot.slane %v3167_v53, %v3877_v34 }
  0xba   : > { %2300 = vmatprep.subr.mxu1 %v2264_v4  ;;  %2400 = vmatprep.subr.mxu0 %v2364_v9  ;;  %v2464_v18 = vsel %vm2462_vm6, %v3415_v10, %v3414_v11  ;;  %v2463_v20 = vsel %vm2462_vm6, %v3414_v11, %v3415_v10  ;;  %v2564_v21 = vsel %vm2562_vm7, %v3420_v12, %v3419_v13 }
  0xbb   : > { %2301 = vmatpush1.msra.mxu1 %v2263_v6  ;;  %2334 = vmatprep.mubr.f32.mxu1 %v3510_v0  ;;  %v3423_v17 = vpop.permute.xlu0 %3422  ;;  %v3428_v19 = vpop.permute.xlu1 %3427  ;;  %v2563_v26 = vsel %vm2562_vm7, %v3419_v13, %v3420_v12  ;;  %v954_v4 = vrot.slane %v3164_v52, %v3877_v34  ;;  %v3170_v12 = vld [vmem:[%s4062_s2 + $0x7] ss:$8 sm:$0x3]  ;;  %v3173_v13 = vld [vmem:[%s4062_s2 + $0x10] ss:$8 sm:$0x3] }
  0xbc   : > { %2401 = vmatpush1.msra.mxu0 %v2363_v14  ;;  %2434 = vmatprep.mubr.f32.mxu0 %v3510_v0  ;;  %v3425_v22 = vunpack.i.h.bf16 %v3423_v17  ;;  %v3424_v23 = vunpack.i.l.bf16 %v3423_v17  ;;  %v3430_v24 = vunpack.i.h.bf16 %v3428_v19  ;;  %v3429_v25 = vunpack.i.l.bf16 %v3428_v19 }
  0xbd   : > { %3205 = vmatmul.mubr.msk.f32.vlgmr.msra.gmra.mxu1 %vm374_vm2, %v3204_v15  ;;  %3208 = vmatmul.mubr.msk.f32.vlgmr.msra.gmra.mxu0 %vm374_vm2, %v3207_v16  ;;  %v958_v19 = vrot.slane %v3164_v52, %v3888_v38  ;;  %v1158_v36 = vrot.slane %v3170_v12, %v3888_v38 }
  0xbe   : > { %2500 = vmatprep.subr.mxu1 %v2464_v18  ;;  %2600 = vmatprep.subr.mxu0 %v2564_v21  ;;  %v2664_v29 = vsel %vm2662_vm8, %v3425_v22, %v3424_v23  ;;  %v2764_v30 = vsel %vm2762_vm9, %v3430_v24, %v3429_v25  ;;  %v2663_v31 = vsel %vm2662_vm8, %v3424_v23, %v3425_v22 }
  0xbf   : > { %2501 = vmatpush1.msra.mxu1 %v2463_v20  ;;  %2534 = vmatprep.mubr.f32.mxu1 %v3510_v0  ;;  %v2763_v32 = vsel %vm2762_vm9, %v3429_v25, %v3430_v24  ;;  %v1058_v23 = vrot.slane %v3167_v53, %v3888_v38  ;;  %v1154_v24 = vrot.slane %v3170_v12, %v3877_v34 }
  0xc0   : > { %2601 = vmatpush1.msra.mxu0 %v2563_v26  ;;  %2634 = vmatprep.mubr.f32.mxu0 %v3510_v0  ;;  %v1254_v25 = vrot.slane %v3173_v13, %v3877_v34 }
  0xc1   : > { %3211 = vmatmul.mubr.msk.f32.vlgmr.msra.gmra.mxu1 %vm374_vm2, %v3210_v27  ;;  %3214 = vmatmul.mubr.msk.f32.vlgmr.msra.gmra.mxu0 %vm374_vm2, %v3213_v28 }
  0xc2   : > { %2700 = vmatprep.subr.mxu1 %v2664_v29  ;;  %2800 = vmatprep.subr.mxu0 %v2764_v30  ;;  %v3176_v30 = vld [vmem:[%s4062_s2 + $0x11] ss:$8 sm:$0x3] }
  0xc3   : > { %2701 = vmatpush1.msra.mxu1 %v2663_v31  ;;  %2734 = vmatprep.mubr.f32.mxu1 %v3510_v0  ;;  %v3179_v31 = vld [vmem:[%s4062_s2 + $0x12] ss:$8 sm:$0x3] }
  0xc4   : > { %2801 = vmatpush1.msra.mxu0 %v2763_v32  ;;  %2834 = vmatprep.mubr.f32.mxu0 %v3510_v0  ;;  %v1454_v39 = vrot.slane %v3179_v31, %v3877_v34 }
  0xc5   : > { %3217 = vmatmul.mubr.msk.f32.vlgmr.msra.gmra.mxu1 %vm374_vm2, %v3216_v3  ;;  %3220 = vmatmul.mubr.msk.f32.vlgmr.msra.gmra.mxu0 %vm374_vm2, %v3219_v33 }
  0xc6   : > { %2949 = vmatprep.mubr.f32.mxu1 %v3510_v0  ;;  %v454_v0 = vrot.slane %v449_v35, %v3877_v34 }
 0x155   : > { %v444_v1 = vpop.f32.mrf.mxu0 }
 0x156   : > { %v461_v48 = vmul.f32 %v454_v0, %v444_v1 }
 0x157   : > { %v446_v40 = vpop.f32.mrf.mxu0 }
 0x158   : > { %v462_v56 = vmul.f32 %v458_v42, %v446_v40 }
 0x159   : > { %v543_v44 = vpop.f32.mrf.mxu1  ;;  %v643_v45 = vpop.f32.mrf.mxu0 }
 0x15a   : > { %v561_v49 = vmul.f32 %v554_v7, %v543_v44  ;;  %v661_v50 = vmul.f32 %v654_v2, %v643_v45  ;;  %v1258_v7 = vrot.slane %v3173_v13, %v3888_v38  ;;  %v1354_v2 = vrot.slane %v3176_v30, %v3877_v34  ;;  %v3182_v44 = vld [vmem:[%s4062_s2 + $0x13] ss:$8 sm:$0x3]  ;;  %v3185_v45 = vld [vmem:[%s4062_s2 + $0x14] ss:$8 sm:$0x3] }
 0x15b   : > { %v545_v54 = vpop.f32.mrf.mxu1  ;;  %v645_v55 = vpop.f32.mrf.mxu0 }
 0x15c   : > { %v563_v57 = vadd.f32 %v561_v49, %v461_v48  ;;  %v562_v58 = vmul.f32 %v558_v43, %v545_v54  ;;  %v662_v60 = vmul.f32 %v658_v46, %v645_v55  ;;  %v1458_v55 = vrot.slane %v3179_v31, %v3888_v38 }
 0x15d   : > { %v743_v61 = vpop.f32.mrf.mxu1  ;;  %v843_v62 = vpop.f32.mrf.mxu0 }
 0x15e   : > { %v663_v6 = vadd.f32 %v661_v50, %v563_v57  ;;  %v564_v9 = vadd.f32 %v562_v58, %v462_v56  ;;  %v761_v10 = vmul.f32 %v754_v47, %v743_v61  ;;  %v861_v11 = vmul.f32 %v854_v51, %v843_v62  ;;  %v3188_v62 = vld [vmem:[%s4062_s2 + $0x15] ss:$8 sm:$0x3] }
 0x15f   : > { %v745_v14 = vpop.f32.mrf.mxu1  ;;  %v845_v15 = vpop.f32.mrf.mxu0  ;;  %v1358_v51 = vrot.slane %v3176_v30, %v3888_v38  ;;  %v1554_v56 = vrot.slane %v3182_v44, %v3877_v34  ;;  %v1647_v57 = vrot.slane %v3185_v45, %v3877_v34 }
 0x160   : > { %v664_v16 = vadd.f32 %v662_v60, %v564_v9  ;;  %v763_v17 = vadd.f32 %v761_v10, %v663_v6  ;;  %v762_v18 = vmul.f32 %v758_v59, %v745_v14  ;;  %v862_v20 = vmul.f32 %v858_v63, %v845_v15  ;;  %v3191_v63 = vld [vmem:[%s4062_s2 + $0x16] ss:$8 sm:$0x3] }
 0x161   : > { %v943_v21 = vpop.f32.mrf.mxu1  ;;  %v1043_v22 = vpop.f32.mrf.mxu0  ;;  %v1651_v15 = vrot.slane %v3185_v45, %v3888_v38 }
 0x162   : > { %v863_v26 = vadd.f32 %v861_v11, %v763_v17  ;;  %v764_v27 = vadd.f32 %v762_v18, %v664_v16  ;;  %v961_v28 = vmul.f32 %v954_v4, %v943_v21  ;;  %v1061_v29 = vmul.f32 %v1054_v5, %v1043_v22  ;;  %v3194_v22 = vld [vmem:[%s4062_s2 + $0x17] ss:$8 sm:$0x3] }
 0x163   : > { %v945_v32 = vpop.f32.mrf.mxu1  ;;  %v1045_v3 = vpop.f32.mrf.mxu0  ;;  %v1558_v11 = vrot.slane %v3182_v44, %v3888_v38  ;;  %v1747_v16 = vrot.slane %v3188_v62, %v3877_v34  ;;  %v1847_v17 = vrot.slane %v3191_v63, %v3877_v34 }
 0x164   : > { %v864_v33 = vadd.f32 %v862_v20, %v764_v27  ;;  %v963_v8 = vadd.f32 %v961_v28, %v863_v26  ;;  %v962_v35 = vmul.f32 %v958_v19, %v945_v32  ;;  %v1062_v37 = vmul.f32 %v1058_v23, %v1045_v3  ;;  %v3197_v23 = vld [vmem:[%s4062_s2 + $0x20] ss:$8 sm:$0x3] }
 0x165   : > { %v1143_v1 = vpop.f32.mrf.mxu1  ;;  %v1243_v0 = vpop.f32.mrf.mxu0  ;;  %v1851_v3 = vrot.slane %v3191_v63, %v3888_v38 }
 0x166   : > { %v1063_v40 = vadd.f32 %v1061_v29, %v963_v8  ;;  %v964_v41 = vadd.f32 %v962_v35, %v864_v33  ;;  %v1161_v42 = vmul.f32 %v1154_v24, %v1143_v1  ;;  %v1261_v43 = vmul.f32 %v1254_v25, %v1243_v0  ;;  %v3200_v0 = vld [vmem:[%s4062_s2 + $0x21] ss:$8 sm:$0x3] }
 0x167   : > { %v1145_v46 = vpop.f32.mrf.mxu1  ;;  %v1245_v47 = vpop.f32.mrf.mxu0  ;;  %v1751_v29 = vrot.slane %v3188_v62, %v3888_v38  ;;  %v1947_v33 = vrot.slane %v3194_v22, %v3877_v34  ;;  %v2047_v8 = vrot.slane %v3197_v23, %v3877_v34 }
 0x168   : > { %v1064_v48 = vadd.f32 %v1062_v37, %v964_v41  ;;  %v1163_v49 = vadd.f32 %v1161_v42, %v1063_v40  ;;  %v1162_v50 = vmul.f32 %v1158_v36, %v1145_v46  ;;  %v1262_v52 = vmul.f32 %v1258_v7, %v1245_v47  ;;  %v3203_v7 = vld [vmem:[%s4062_s2 + $0x22] ss:$8 sm:$0x3] }
 0x169   : > { %v1343_v53 = vpop.f32.mrf.mxu1  ;;  %v1443_v54 = vpop.f32.mrf.mxu0  ;;  %v2051_v47 = vrot.slane %v3197_v23, %v3888_v38 }
 0x16a   : > { %v1263_v58 = vadd.f32 %v1261_v43, %v1163_v49  ;;  %v1164_v59 = vadd.f32 %v1162_v50, %v1064_v48  ;;  %v1361_v60 = vmul.f32 %v1354_v2, %v1343_v53  ;;  %v1461_v61 = vmul.f32 %v1454_v39, %v1443_v54  ;;  %v3206_v54 = vld [vmem:[%s4062_s2 + $0x23] ss:$8 sm:$0x3] }
 0x16b   : > { %v1345_v4 = vpop.f32.mrf.mxu1  ;;  %v1445_v5 = vpop.f32.mrf.mxu0  ;;  %v1951_v43 = vrot.slane %v3194_v22, %v3888_v38  ;;  %v2147_v48 = vrot.slane %v3200_v0, %v3877_v34  ;;  %v2247_v49 = vrot.slane %v3203_v7, %v3877_v34 }
 0x16c   : > { %v1264_v6 = vadd.f32 %v1262_v52, %v1164_v59  ;;  %v1363_v9 = vadd.f32 %v1361_v60, %v1263_v58  ;;  %v1362_v10 = vmul.f32 %v1358_v51, %v1345_v4  ;;  %v1462_v12 = vmul.f32 %v1458_v55, %v1445_v5  ;;  %v3209_v55 = vld [vmem:[%s4062_s2 + $0x24] ss:$8 sm:$0x3] }
 0x16d   : > { %v1543_v13 = vpop.f32.mrf.mxu1  ;;  %v1636_v14 = vpop.f32.mrf.mxu0  ;;  %v2251_v5 = vrot.slane %v3203_v7, %v3888_v38 }
 0x16e   : > { %v1463_v18 = vadd.f32 %v1461_v61, %v1363_v9  ;;  %v1364_v19 = vadd.f32 %v1362_v10, %v1264_v6  ;;  %v1561_v20 = vmul.f32 %v1554_v56, %v1543_v13  ;;  %v1654_v21 = vmul.f32 %v1647_v57, %v1636_v14  ;;  %v3212_v14 = vld [vmem:[%s4062_s2 + $0x25] ss:$8 sm:$0x3] }
 0x16f   : > { %v1545_v24 = vpop.f32.mrf.mxu1  ;;  %v1638_v25 = vpop.f32.mrf.mxu0  ;;  %v2151_v61 = vrot.slane %v3200_v0, %v3888_v38  ;;  %v2347_v6 = vrot.slane %v3206_v54, %v3877_v34  ;;  %v2447_v9 = vrot.slane %v3209_v55, %v3877_v34 }
 0x170   : > { %v1464_v26 = vadd.f32 %v1462_v12, %v1364_v19  ;;  %v1563_v27 = vadd.f32 %v1561_v20, %v1463_v18  ;;  %v1562_v28 = vmul.f32 %v1558_v11, %v1545_v24  ;;  %v1655_v30 = vmul.f32 %v1651_v15, %v1638_v25  ;;  %v3215_v15 = vld [vmem:[%s4062_s2 + $0x26] ss:$8 sm:$0x3] }
 0x171   : > { %v1736_v31 = vpop.f32.mrf.mxu1  ;;  %v1836_v32 = vpop.f32.mrf.mxu0  ;;  %v2451_v25 = vrot.slane %v3209_v55, %v3888_v38 }
 0x172   : > { %v1656_v35 = vadd.f32 %v1654_v21, %v1563_v27  ;;  %v1564_v36 = vadd.f32 %v1562_v28, %v1464_v26  ;;  %v1754_v37 = vmul.f32 %v1747_v16, %v1736_v31  ;;  %v1854_v1 = vmul.f32 %v1847_v17, %v1836_v32  ;;  %v3218_v32 = vld [vmem:[%s4062_s2 + $0x27] ss:$8 sm:$0x3] }
 0x173   : > { %v1738_v2 = vpop.f32.mrf.mxu1  ;;  %v1838_v39 = vpop.f32.mrf.mxu0  ;;  %v2351_v21 = vrot.slane %v3206_v54, %v3888_v38  ;;  %v2547_v26 = vrot.slane %v3212_v14, %v3877_v34  ;;  %v2647_v27 = vrot.slane %v3215_v15, %v3877_v34 }
 0x174   : > { %v1657_v40 = vadd.f32 %v1655_v30, %v1564_v36  ;;  %v1756_v41 = vadd.f32 %v1754_v37, %v1656_v35  ;;  %v1755_v42 = vmul.f32 %v1751_v29, %v1738_v2  ;;  %v1855_v44 = vmul.f32 %v1851_v3, %v1838_v39  ;;  %v3221_v3 = vld [vmem:[%s4062_s2 + $0x30] ss:$8 sm:$0x3] }
 0x175   : > { %v1936_v45 = vpop.f32.mrf.mxu1  ;;  %v2036_v46 = vpop.f32.mrf.mxu0  ;;  %v2651_v39 = vrot.slane %v3215_v15, %v3888_v38  ;;  %v2851_v55 = vrot.slane %v3221_v3, %v3888_v38 }
 0x176   : > { %v1856_v50 = vadd.f32 %v1854_v1, %v1756_v41  ;;  %v1757_v51 = vadd.f32 %v1755_v42, %v1657_v40  ;;  %v1954_v52 = vmul.f32 %v1947_v33, %v1936_v45  ;;  %v2054_v53 = vmul.f32 %v2047_v8, %v2036_v46 }
 0x177   : > { %v1938_v56 = vpop.f32.mrf.mxu1  ;;  %v2038_v57 = vpop.f32.mrf.mxu0  ;;  %v2551_v1 = vrot.slane %v3212_v14, %v3888_v38  ;;  %v2747_v40 = vrot.slane %v3218_v32, %v3877_v34  ;;  %v2847_v41 = vrot.slane %v3221_v3, %v3877_v34 }
 0x178   : > { %v1857_v58 = vadd.f32 %v1855_v44, %v1757_v51  ;;  %v1956_v59 = vadd.f32 %v1954_v52, %v1856_v50  ;;  %v1955_v60 = vmul.f32 %v1951_v43, %v1938_v56  ;;  %v2055_v62 = vmul.f32 %v2051_v47, %v2038_v57 }
 0x179   : > { %v2136_v63 = vpop.f32.mrf.mxu1  ;;  %v2236_v4 = vpop.f32.mrf.mxu0  ;;  %v2751_v51 = vrot.slane %v3218_v32, %v3888_v38 }
 0x17a   : > { %v2056_v10 = vadd.f32 %v2054_v53, %v1956_v59  ;;  %v1957_v11 = vadd.f32 %v1955_v60, %v1857_v58  ;;  %v2154_v12 = vmul.f32 %v2147_v48, %v2136_v63  ;;  %v2254_v13 = vmul.f32 %v2247_v49, %v2236_v4 }
 0x17b   : > { %v2138_v16 = vpop.f32.mrf.mxu1  ;;  %v2238_v17 = vpop.f32.mrf.mxu0 }
 0x17c   : > { %v2057_v18 = vadd.f32 %v2055_v62, %v1957_v11  ;;  %v2156_v19 = vadd.f32 %v2154_v12, %v2056_v10  ;;  %v2155_v20 = vmul.f32 %v2151_v61, %v2138_v16  ;;  %v2255_v22 = vmul.f32 %v2251_v5, %v2238_v17  ;;  %v2862_v5 = vpop.permute.xlu0 %2861  ;;  %v363_v12 = vld [vmem:[%s350_s17] sm:$0x3]  ;;  %s3432_s17 = scalar_lea.vmem %s3015_s30, 128 }
 0x17d   : > { %v2336_v23 = vpop.f32.mrf.mxu1  ;;  %v2436_v24 = vpop.f32.mrf.mxu0  ;;  %v2876_v15 = vrot.slane %v363_v12, %v3888_v38  ;;  %v2872_v16 = vrot.slane %v363_v12, %v3877_v34  ;;  %p3433_p12 = scmp.ne.s32.totalorder %s3015_s30, %s3432_s17  ;;  %p3440_p2 = scmp.lt.s32.totalorder %s3438_s21, %s3432_s17 }
 0x17e   : > { %v2256_v28 = vadd.f32 %v2254_v13, %v2156_v19  ;;  %v2157_v29 = vadd.f32 %v2155_v20, %v2057_v18  ;;  %v2354_v30 = vmul.f32 %v2347_v6, %v2336_v23  ;;  %v2454_v31 = vmul.f32 %v2447_v9, %v2436_v24 }
 0x17f   : > { %v2338_v33 = vpop.f32.mrf.mxu1  ;;  %v2438_v8 = vpop.f32.mrf.mxu0  ;;  %v2980_v23 = vsel %vm2978_vm10, %v2876_v15, 0.0  ;;  %p3434_p13 = pnand %p3433_p12, %p3617_p4  ;;  %p3441_p3 = por %p3440_p2, %p3439_p1 }
 0x180   : > { %v2257_v35 = vadd.f32 %v2255_v22, %v2157_v29  ;;  %v2356_v36 = vadd.f32 %v2354_v30, %v2256_v28  ;;  %v2355_v37 = vmul.f32 %v2351_v21, %v2338_v33  ;;  %v2455_v0 = vmul.f32 %v2451_v25, %v2438_v8  ;;  %v2881_v21 = vld [vmem:[%s4065_s5] sm:$0xf] }
 0x181   : > { %v2536_v7 = vpop.f32.mrf.mxu1  ;;  %v2636_v2 = vpop.f32.mrf.mxu0  ;;  %v2979_v22 = vsel %vm2978_vm10, %v2872_v16, 0.0  ;;  %p3435_p0 = pneg %p3434_p13 }
 0x182   : > { %v2456_v42 = vadd.f32 %v2454_v31, %v2356_v36  ;;  %v2357_v43 = vadd.f32 %v2355_v37, %v2257_v35  ;;  %v2554_v44 = vmul.f32 %v2547_v26, %v2536_v7  ;;  %v2654_v45 = vmul.f32 %v2647_v27, %v2636_v2 }
 0x183   : > { %v2538_v46 = vpop.f32.mrf.mxu1  ;;  %v2638_v47 = vpop.f32.mrf.mxu0  ;;  %v2981_v24 = vadd.f32 %v2980_v23, %v2979_v22  ;;  %p3442_p5 = pnand %p3441_p3, %p3435_p0 }
 0x184   : > { %v2457_v48 = vadd.f32 %v2455_v0, %v2357_v43  ;;  %v2556_v49 = vadd.f32 %v2554_v44, %v2456_v42  ;;  %v2555_v50 = vmul.f32 %v2551_v1, %v2538_v46  ;;  %v2655_v52 = vmul.f32 %v2651_v39, %v2638_v47 }
 0x185   : > { %v2736_v53 = vpop.f32.mrf.mxu1  ;;  %v2836_v54 = vpop.f32.mrf.mxu0  ;;  %2982 = vadd.xlane.f32.xlu0 %v2981_v24 }
 0x186   : > { %v2656_v56 = vadd.f32 %v2654_v45, %v2556_v49  ;;  %v2557_v57 = vadd.f32 %v2555_v50, %v2457_v48  ;;  %v2754_v58 = vmul.f32 %v2747_v40, %v2736_v53  ;;  %v2854_v59 = vmul.f32 %v2847_v41, %v2836_v54 }
 0x187   : > { %v2738_v60 = vpop.f32.mrf.mxu1  ;;  %v2838_v61 = vpop.f32.mrf.mxu0 }
 0x188   : > { %v2657_v62 = vadd.f32 %v2655_v52, %v2557_v57  ;;  %v2756_v63 = vadd.f32 %v2754_v58, %v2656_v56  ;;  %v2755_v4 = vmul.f32 %v2751_v51, %v2738_v60  ;;  %v2855_v10 = vmul.f32 %v2851_v55, %v2838_v61 }
 0x18a   : > { %v2856_v6 = vadd.f32 %v2854_v59, %v2756_v63  ;;  %v2757_v9 = vadd.f32 %v2755_v4, %v2657_v62 }
 0x18c   : > { %v2857_v11 = vadd.f32 %v2855_v10, %v2757_v9  ;;  %v2864_v13 = vadd.f32 %v2862_v5, %v2856_v6 }
 0x18e   : > { %v2865_v14 = vadd.f32 %v2862_v5, %v2857_v11  ;;  %v2866_v17 = vmax.f32 %v2864_v13, 0.0 }
 0x190   : > { %v2867_v18 = vmax.f32 %v2865_v14, 0.0  ;;  %v2879_v20 = vmul.f32 %v2872_v16, %v2866_v17 }
 0x192   : > { %v2880_v19 = vmul.f32 %v2876_v15, %v2867_v18 }
 0x194   : > { %2915 = vmatprep.subr.mxu1 %v2880_v19 }
 0x195   : > { %2916 = vmatpush1.msra.mxu1 %v2879_v20 }
 0x196   : > { %3222 = vmatmul.mubr.msk.f32.vlgmr.msra.gmra.mxu1 %vm374_vm2, %v2881_v21 }
 0x256   : > { %v2951_v38 = vpop.f32.mrf.mxu1 }
 0x257   : > { %v2969_v25 = vmul.f32 %v2951_v38, %v2951_v38  ;;  %v2962_v30 = vsel %vm2961_vm11, %v2951_v38, 0.0 }
 0x258   : > { %v2953_v26 = vpop.f32.mrf.mxu1 }
 0x259   : > { %v2958_v27 = vcombine.low %v2951_v38, %v2953_v26  ;;  %v2963_v28 = vsel %vm2961_vm11, %v2953_v26, 0.0  ;;  %v2970_v29 = vmul.f32 %v2953_v26, %v2953_v26  ;;  %v2971_v3 = vsel %vm2961_vm11, %v2969_v25, 0.0 }
 0x25a   : > { %v2964_v31 = vadd.f32 %v2963_v28, %v2962_v30 }
 0x25b   : > { %v2972_v32 = vsel %vm2961_vm11, %v2970_v29, 0.0  ;;  %2960 = vst [vmem:[%s323_s22] sm:$0xff] %v2958_v27 }
 0x25c   : > { %2965 = vadd.xlane.f32.xlu1 %v2964_v31  ;;  %v2973_v33 = vadd.f32 %v2972_v32, %v2971_v3 }
 0x260   : > { %2974 = vadd.xlane.f32.xlu1 %v2973_v33 }
 0x261   : > { %3445 = shalt.err (!%p3442_p5)
}
 0x262   : > { %s3446_s27 = scalar_lea.hbm %s3012_s12, 128  ;;  %s3450_s23 = scalar_lea.hbm %s4066_s6, 256 }
 0x263   : > { %p3447_p6 = scmp.ne.s32.totalorder %s3012_s12, %s3446_s27  ;;  %p3451_p10 = scmp.lt.s32.totalorder %s3012_s12, %s4066_s6 }
 0x264   : > { %p3452_p11 = scmp.lt.s32.totalorder %s3450_s23, %s3446_s27 }
 0x265   : > { %p3448_p7 = pnand %p3447_p6, %p3617_p4 }
 0x266   : > { %p3453_p12 = por %p3452_p11, %p3451_p10 }
 0x267   : > { %p3449_p9 = pneg %p3448_p7 }
 0x269   : > { %p3454_p13 = pnand %p3453_p12, %p3449_p9 }
 0x26b   : > { %3457 = shalt.err (!%p3454_p13)
}
 0x26c   : > { %3230 = dma.vmem_to_hbm [thread:$0]  (%p3617_p4), %s3015_s30, 128, %s3012_s12, %s2991_s16   ;;  %vm2967_vm2 = vcmask 3072   ;;  %v2983_v8 = vpop.xlane.xlu0 %2982  ;;  %vm2976_vm12 = vcmask 11272   ;;  %vm2988_vm13 = vcmask 19472  }
 0x26d   : > { %s3148_s17 = sshll.u32 %s3634_s15, 2  ;;  %v2987_v36 = vrot.slane %v2983_v8, %v3877_v34 }
 0x26e   : > { %s359_s21 = scalar_lea.vmem %s4067_s7, %s3148_s17 }
 0x2e5   : > { %v2966_v35 = vpop.xlane.xlu1 %2965 }
 0x2e6   : > { %2968 = vst.msk [vmem:[%s359_s21] sm:$0xf] %vm2967_vm2, %v2966_v35 }
 0x2e9   : > { %v2975_v37 = vpop.xlane.xlu1 %2974 }
 0x2ea   : > { %2977 = vst.msk [vmem:[%s359_s21] sm:$0xf] %vm2976_vm12, %v2975_v37 }
 0x2eb   : > { %2989 = vst.msk [vmem:[%s359_s21] sm:$0xf] %vm2988_vm13, %v2987_v36 }
 0x2ec PF: > { %p3236_p4 = scmp.ge.s32.totalorder %s3508_s29, 2  ;;  %s3029_s11 = sand.u32 1, %s3488_s24  }
 0x2ed   : > { %s3030_s15 = scalar_lea.sflag [#allocation3], %s3029_s11 }
 0x2ee   : > { %p3233_p0 = pnand %p3236_p4, %p3624_p8 }
 0x2f0   : > { %p3234_p1 = pneg %p3233_p0 }
 0x2f2   : > { %3483 = dma.done.wait (%p3234_p1), %s3030_s15, 128  }
 0x2f3   : > { %3485 = vsyncadd (%p3234_p1), %s3030_s15, 4294967168  ;;  %s21_s29 = sadd.s32 1, %s3508_s29   ;;  %s4070_s24 = smov %s3492_s25 }
 0x2f4   : > { %p18_p2 = scmp.ge.s32.totalorder %s21_s29, 4   ;;  %s4071_s25 = smov %s3496_s26 }
 0x2f5   : > { %s4072_s26 = smov %s3630_s14  ;;  %s4073_s27 = smov %s3504_s28 }
 0x2f6   : > { %s4074_s28 = smov %s4076_s9  ;;  %20 = sbr.rel (!%p18_p2) target bundleno = 4 (0x4), region = 142 }
 0x2fb   :  { %3045 = vsyncpa [#allocation3], 1 }
 0x2fc   :  { %3047 = vsyncpa [#allocation3 + $0x1], 1 }

</bundles_post_ra>
